<compile_context>
chip_gen: v6e
topology: v6e:2x2x1
jax: 0.10.0
libtpu: 0.0.40
codegen_flags: <defaults>
</compile_context>

<pallas_src>
import functools

import jax
import jax.numpy as jnp
import numpy as np
from jax import lax
from jax.experimental import pallas as pl
from jax.experimental.pallas import tpu as pltpu


def _swish(x):
    return x * jax.nn.sigmoid(x)


def _pick_row_tile(h, preferred=8):
    rt = min(preferred, h)
    while h % rt != 0:
        rt -= 1
    return rt


# -----------------------------------------------------------------------------
# Kernel 1: fused [1x1 expand + BN0 + swish] -> [KxK depthwise + BN1 + swish]
#           + partial sums for the SE global average pool.
# Grid: (batch, H-row tiles). Each row tile recomputes the expand matmul for its
# (K-1)-row halo; the depthwise zero padding lives only in a small VMEM scratch.
# -----------------------------------------------------------------------------
def expand_dw_kernel(xpad_ref, w_exp_ref, s0_ref, b0_ref, w_dw_ref, s1_ref,
                     b1_ref, y1_ref, psum_ref, xe_ref, *, k, row_tile, H, W):
    pad = (k - 1) // 2
    halo = row_tile + 2 * pad
    r = pl.program_id(1)
    cin = xpad_ref.shape[3]
    cexp = w_exp_ref.shape[1]

    # ---- expand 1x1 conv + BN0 + swish over the halo'd row range ----
    start = pl.multiple_of(r * row_tile, row_tile)
    xrows = xpad_ref[0, pl.ds(start, halo), :, :]                 # [halo, W, Cin]
    xm = xrows.reshape(halo * W, cin)
    ye = jnp.dot(xm, w_exp_ref[...], preferred_element_type=jnp.float32)
    ye = _swish(ye * s0_ref[...] + b0_ref[...])                   # [halo*W, Cexp]
    ye = ye.reshape(halo, W, cexp)

    # Rows that fall in the image's zero padding must be zero AFTER BN0+swish
    # (the depthwise 'same' conv zero-pads the activation, not the raw input).
    row_g = (r * row_tile - pad
             + lax.broadcasted_iota(jnp.int32, (halo, 1, 1), 0))
    ye = jnp.where((row_g >= 0) & (row_g < H), ye, 0.0)

    # W-zero-padded activation tile in VMEM scratch (borders = depthwise padding).
    xe_ref[...] = jnp.zeros_like(xe_ref)
    xe_ref[:, pad:pad + W, :] = ye

    # ---- depthwise KxK conv (stride 1) + BN1 + swish (VPU tap loop) ----
    xe = xe_ref[...]
    acc = jnp.zeros((row_tile, W, cexp), jnp.float32)
    for i in range(k):                 # static, unrolled k*k taps
        for j in range(k):
            acc = acc + xe[i:i + row_tile, j:j + W, :] * w_dw_ref[i, j]
    y1 = _swish(acc * s1_ref[...] + b1_ref[...])                  # [rt, W, Cexp] f32

    y1_ref[0] = y1.astype(y1_ref.dtype)                           # bf16 HBM storage

    # ---- SE global-average-pool partial sums (accumulated over the row-tile axis) ----
    @pl.when(r == 0)
    def _():
        psum_ref[...] = jnp.zeros_like(psum_ref)
    psum_ref[...] += (y1.reshape(row_tile * W, cexp)
                      .sum(axis=0, keepdims=True)
                      .reshape(1, 1, cexp))


# -----------------------------------------------------------------------------
# Kernel 2: SE gate from the pooled sums (tiny; fully VMEM resident, no grid).
# -----------------------------------------------------------------------------
def se_gate_kernel(psum_ref, wr_ref, br_ref, we_ref, be_ref, gate_ref, *, inv_hw):
    pooled = psum_ref[...] * inv_hw                               # global mean [B, Cexp]
    s = jnp.dot(pooled, wr_ref[...], preferred_element_type=jnp.float32) + br_ref[...]
    s = _swish(s)
    s = jnp.dot(s, we_ref[...], preferred_element_type=jnp.float32) + be_ref[...]
    gate_ref[...] = jax.nn.sigmoid(s)


# -----------------------------------------------------------------------------
# Kernel 3: gate * activation -> 1x1 project + BN2 -> + residual.
# Grid: (batch, H-row tiles). Output is produced directly in flattened NCHW:
# the project matmul emits [Cout, rowtile*W] (rowtile*W on the 128-lane axis),
# so stores are lane-dense and no output transpose is needed.
# -----------------------------------------------------------------------------
def gate_project_kernel(y1_ref, gate_ref, w_proj_t_ref, s2_ref, b2_ref,
                        res_ref, o_ref):
    _, rt, w, cexp = y1_ref.shape
    m = rt * w
    xg = y1_ref[0].astype(jnp.float32).reshape(m, cexp) * gate_ref[0]   # [M, Cexp]
    # [Cout, Cexp] x [M, Cexp]^T -> [Cout, M]  (rhs-transposed MXU matmul)
    y = lax.dot_general(w_proj_t_ref[...], xg,
                        dimension_numbers=(((1,), (1,)), ((), ())),
                        preferred_element_type=jnp.float32)
    y = y * s2_ref[...] + b2_ref[...]                                   # [Cout, 1] bcast
    o_ref[0] = y + res_ref[0]                                           # + id_skip residual


def mb_expand_conv_block(x_nchw, p, *, row_tile=8):
    """Pallas forward. x_nchw: [B, Cin, H, W] float32. Returns [B, Cout, H, W]."""
    x = x_nchw.astype(jnp.float32)
    B, Cin, H, W = x.shape
    Cexp = p['w_exp'].shape[1]
    Cout = p['w_proj'].shape[1]
    Cse = p['w_se_r'].shape[1]
    K = p['w_dw'].shape[0]
    pad = (K - 1) // 2
    rt = _pick_row_tile(H, row_tile)
    RT = H // rt

    # NHWC view of the (small, Cin-channel) input, zero-padded along H only so each
    # row tile can read its (K-1)-row halo with a plain dynamic slice.
    # TODO(synk): this transpose/pad could be folded into the expand matmul itself.
    x_nhwc_pad = jnp.pad(jnp.transpose(x, (0, 2, 3, 1)),
                         ((0, 0), (pad, pad), (0, 0), (0, 0)))

    # ---- kernel 1: expand + BN0 + swish + depthwise + BN1 + swish + pool sums ----
    y1, psum = pl.pallas_call(
        functools.partial(expand_dw_kernel, k=K, row_tile=rt, H=H, W=W),
        grid=(B, RT),
        in_specs=[
            pl.BlockSpec((1, H + 2 * pad, W, Cin), lambda b, r: (b, 0, 0, 0)),
            pl.BlockSpec((Cin, Cexp), lambda b, r: (0, 0)),
            pl.BlockSpec((1, Cexp), lambda b, r: (0, 0)),
            pl.BlockSpec((1, Cexp), lambda b, r: (0, 0)),
            pl.BlockSpec((K, K, 1, Cexp), lambda b, r: (0, 0, 0, 0)),
            pl.BlockSpec((1, Cexp), lambda b, r: (0, 0)),
            pl.BlockSpec((1, Cexp), lambda b, r: (0, 0)),
        ],
        out_specs=[
            pl.BlockSpec((1, rt, W, Cexp), lambda b, r: (b, r, 0, 0)),
            pl.BlockSpec((1, 1, Cexp), lambda b, r: (b, 0, 0)),
        ],
        out_shape=[
            jax.ShapeDtypeStruct((B, H, W, Cexp), jnp.bfloat16),   # bf16 in HBM
            jax.ShapeDtypeStruct((B, 1, Cexp), jnp.float32),       # pooled partial sums
        ],
        scratch_shapes=[pltpu.VMEM((rt + 2 * pad, W + 2 * pad, Cexp), jnp.float32)],
        compiler_params=pltpu.CompilerParams(
            dimension_semantics=("parallel", "arbitrary")),
    )(x_nhwc_pad, p['w_exp'],
      p['scale0'].reshape(1, Cexp), p['shift0'].reshape(1, Cexp),
      p['w_dw'].reshape(K, K, 1, Cexp),
      p['scale1'].reshape(1, Cexp), p['shift1'].reshape(1, Cexp))

    # ---- kernel 2: SE gate (tiny matmuls, whole arrays in VMEM) ----
    gate = pl.pallas_call(
        functools.partial(se_gate_kernel, inv_hw=1.0 / float(H * W)),
        out_shape=jax.ShapeDtypeStruct((B, Cexp), jnp.float32),
        in_specs=[pl.BlockSpec(memory_space=pltpu.MemorySpace.VMEM)] * 5,
        out_specs=pl.BlockSpec(memory_space=pltpu.MemorySpace.VMEM),
    )(psum.reshape(B, Cexp), p['w_se_r'], p['b_se_r'].reshape(1, Cse),
      p['w_se_e'], p['b_se_e'].reshape(1, Cexp))

    # ---- kernel 3: gate * act -> project + BN2 -> + residual (lane-dense NCHW out) ----
    x_flat = x.reshape(B, Cin, H * W)                    # residual, already NCHW layout
    out_flat = pl.pallas_call(
        gate_project_kernel,
        grid=(B, RT),
        in_specs=[
            pl.BlockSpec((1, rt, W, Cexp), lambda b, r: (b, r, 0, 0)),
            pl.BlockSpec((1, 1, Cexp), lambda b, r: (b, 0, 0)),
            pl.BlockSpec((Cout, Cexp), lambda b, r: (0, 0)),
            pl.BlockSpec((Cout, 1), lambda b, r: (0, 0)),
            pl.BlockSpec((Cout, 1), lambda b, r: (0, 0)),
            pl.BlockSpec((1, Cout, rt * W), lambda b, r: (b, 0, r)),
        ],
        out_specs=pl.BlockSpec((1, Cout, rt * W), lambda b, r: (b, 0, r)),
        out_shape=jax.ShapeDtypeStruct((B, Cout, H * W), jnp.float32),
        compiler_params=pltpu.CompilerParams(
            dimension_semantics=("parallel", "parallel")),
    )(y1, gate.reshape(B, 1, Cexp), jnp.transpose(p['w_proj'], (1, 0)),
      p['scale2'].reshape(Cout, 1), p['shift2'].reshape(Cout, 1), x_flat)

    return out_flat.reshape(B, Cout, H, W)               # free reshape, already NCHW


# ------------------------- parameter init (deterministic) -------------------------
def init_params(key, cin, cexp, cse, cout, k, eps):
    ks = jax.random.split(key, 10)

    def n(k_, shape, scale=0.1):
        return scale * jax.random.normal(k_, shape, jnp.float32)

    def bn(k_, c):
        k1, k2, k3, k4 = jax.random.split(k_, 4)
        gamma = 1.0 + 0.1 * jax.random.normal(k1, (c,), jnp.float32)
        beta = 0.1 * jax.random.normal(k2, (c,), jnp.float32)
        mean = 0.1 * jax.random.normal(k3, (c,), jnp.float32)
        var = 1.0 + 0.1 * jax.random.uniform(k4, (c,), jnp.float32)
        scale = gamma / jnp.sqrt(var + eps)      # folded BN (eval mode)
        shift = beta - mean * scale
        return scale, shift

    p = {}
    p['w_exp'] = n(ks[0], (cin, cexp))                 # expand 1x1 conv (no bias)
    p['scale0'], p['shift0'] = bn(ks[1], cexp)
    p['w_dw'] = n(ks[2], (k, k, cexp))                 # depthwise KxK conv (no bias)
    p['scale1'], p['shift1'] = bn(ks[3], cexp)
    p['w_se_r'] = n(ks[4], (cexp, cse))                # se_reduce 1x1 conv (+bias)
    p['b_se_r'] = n(ks[5], (cse,))
    p['w_se_e'] = n(ks[6], (cse, cexp))                # se_expand 1x1 conv (+bias)
    p['b_se_e'] = n(ks[7], (cexp,))
    p['w_proj'] = n(ks[8], (cexp, cout))               # project 1x1 conv (no bias)
    p['scale2'], p['shift2'] = bn(ks[9], cout)
    return p


# ------------------------- pure-JAX reference (lax.conv) -------------------------
def ref_forward(x_nchw, p):
    x = jnp.transpose(x_nchw, (0, 2, 3, 1)).astype(jnp.float32)
    dn = ('NHWC', 'HWIO', 'NHWC')
    Cin = x.shape[-1]
    Cexp = p['w_exp'].shape[1]
    Cout = p['w_proj'].shape[1]
    K = p['w_dw'].shape[0]

    y = lax.conv_general_dilated(x, p['w_exp'].reshape(1, 1, Cin, Cexp),
                                 (1, 1), 'VALID', dimension_numbers=dn)
    y = _swish(y * p['scale0'] + p['shift0'])
    y = lax.conv_general_dilated(y, p['w_dw'].reshape(K, K, 1, Cexp),
                                 (1, 1), 'SAME', dimension_numbers=dn,
                                 feature_group_count=Cexp)
    y = _swish(y * p['scale1'] + p['shift1'])
    pooled = jnp.mean(y, axis=(1, 2))
    s = _swish(pooled @ p['w_se_r'] + p['b_se_r'])
    s = s @ p['w_se_e'] + p['b_se_e']
    y = y * jax.nn.sigmoid(s)[:, None, None, :]
    y = lax.conv_general_dilated(y, p['w_proj'].reshape(1, 1, Cexp, Cout),
                                 (1, 1), 'VALID', dimension_numbers=dn)
    y = y * p['scale2'] + p['shift2']
    y = y + x                                        # id_skip path
    return jnp.transpose(y, (0, 3, 1, 2))


if __name__ == "__main__":
    key = jax.random.PRNGKey(0)
    kx, kp = jax.random.split(key)

    # Small MBConv config: stride=1, input_filters == output_filters -> skip active.
    B, Cin, H, W = 2, 8, 16, 16
    expand_ratio, se_ratio, K = 4, 0.25, 3
    Cexp = Cin * expand_ratio                 # 32
    Cse = max(1, int(Cin * se_ratio))         # 2
    Cout = Cin                                # 8
    bn_eps = 1e-3

    x = jax.random.normal(kx, (B, Cin, H, W), jnp.float32)
    params = init_params(kp, Cin, Cexp, Cse, Cout, K, bn_eps)

    fwd = jax.jit(mb_expand_conv_block)
    out = jax.block_until_ready(fwd(x, params))
    ref = jax.block_until_ready(ref_forward(x, params))
    np.testing.assert_allclose(np.asarray(out), np.asarray(ref), rtol=2e-2, atol=2e-2)

    print("KERNEL_OK")
</pallas_src>

<mosaic_0001>
module attributes {stable_mosaic.version = 11 : i64} {
  func.func @expand_dw_kernel(%arg0: i32, %arg1: i32, %arg2: memref<1x18x16x8xf32, #tpu.memory_space<vmem>>, %arg3: memref<8x32xf32, #tpu.memory_space<vmem>>, %arg4: memref<1x32xf32, #tpu.memory_space<vmem>>, %arg5: memref<1x32xf32, #tpu.memory_space<vmem>>, %arg6: memref<3x3x1x32xf32, #tpu.memory_space<vmem>>, %arg7: memref<1x32xf32, #tpu.memory_space<vmem>>, %arg8: memref<1x32xf32, #tpu.memory_space<vmem>>, %arg9: memref<1x8x16x32xbf16, #tpu.memory_space<vmem>>, %arg10: memref<1x1x32xf32, #tpu.memory_space<vmem>>, %arg11: memref<10x18x32xf32, #tpu.memory_space<vmem>>) attributes {dimension_semantics = [#tpu.dimension_semantics<parallel>, #tpu.dimension_semantics<arbitrary>], iteration_bounds = array<i64: 2, 2>, scalar_prefetch = 0 : i64, scratch_operands = 1 : i64, tpu.core_type = #tpu.core_type<tc>, window_params = [{transform_indices = @transform_0, window_bounds = array<i64: 1, 18, 16, 8>}, {pipeline_mode = #tpu.pipeline_mode<synchronous>, transform_indices = @transform_1, window_bounds = array<i64: 8, 32>}, {pipeline_mode = #tpu.pipeline_mode<synchronous>, transform_indices = @transform_2, window_bounds = array<i64: 1, 32>}, {pipeline_mode = #tpu.pipeline_mode<synchronous>, transform_indices = @transform_3, window_bounds = array<i64: 1, 32>}, {pipeline_mode = #tpu.pipeline_mode<synchronous>, transform_indices = @transform_4, window_bounds = array<i64: 3, 3, 1, 32>}, {pipeline_mode = #tpu.pipeline_mode<synchronous>, transform_indices = @transform_5, window_bounds = array<i64: 1, 32>}, {pipeline_mode = #tpu.pipeline_mode<synchronous>, transform_indices = @transform_6, window_bounds = array<i64: 1, 32>}, {transform_indices = @transform_7, window_bounds = array<i64: 1, 8, 16, 32>}, {transform_indices = @transform_8, window_bounds = array<i64: 1, 1, 32>}]} {
    %c8_i32 = arith.constant 8 : i32
    %0 = arith.muli %arg1, %c8_i32 : i32
    %1 = tpu.assume_multiple %0, 8 : i32
    %c0 = arith.constant 0 : index
    %2 = arith.index_cast %1 : i32 to index
    %c0_0 = arith.constant 0 : index
    %c0_1 = arith.constant 0 : index
    %3 = vector.load %arg2[%c0, %2, %c0_0, %c0_1] : memref<1x18x16x8xf32, #tpu.memory_space<vmem>>, vector<1x10x16x8xf32>
    %4 = vector.shape_cast %3 : vector<1x10x16x8xf32> to vector<10x16x8xf32>
    %5 = vector.shape_cast %4 : vector<10x16x8xf32> to vector<160x8xf32>
    %c0_2 = arith.constant 0 : index
    %c0_3 = arith.constant 0 : index
    %6 = vector.load %arg3[%c0_2, %c0_3] : memref<8x32xf32, #tpu.memory_space<vmem>>, vector<8x32xf32>
    %cst = arith.constant dense<0.000000e+00> : vector<160x32xf32>
    %7 = tpu.matmul %5, %6, %cst {dimension_numbers = #tpu.dot_dimension_numbers<[1], [0], [0], [1], [0, 0, 1, 1], [], []>} : vector<160x8xf32>, vector<8x32xf32>, vector<160x32xf32> -> vector<160x32xf32>
    %c0_4 = arith.constant 0 : index
    %c0_5 = arith.constant 0 : index
    %8 = vector.load %arg4[%c0_4, %c0_5] : memref<1x32xf32, #tpu.memory_space<vmem>>, vector<1x32xf32>
    %9 = vector.broadcast %8 : vector<1x32xf32> to vector<160x32xf32>
    %10 = arith.mulf %7, %9 : vector<160x32xf32>
    %c0_6 = arith.constant 0 : index
    %c0_7 = arith.constant 0 : index
    %11 = vector.load %arg5[%c0_6, %c0_7] : memref<1x32xf32, #tpu.memory_space<vmem>>, vector<1x32xf32>
    %12 = vector.broadcast %11 : vector<1x32xf32> to vector<160x32xf32>
    %13 = arith.addf %10, %12 : vector<160x32xf32>
    %14 = arith.negf %13 : vector<160x32xf32>
    %15 = math.exp %14 : vector<160x32xf32>
    %cst_8 = arith.constant 1.000000e+00 : f32
    %16 = vector.broadcast %cst_8 : f32 to vector<160x32xf32>
    %17 = arith.addf %16, %15 : vector<160x32xf32>
    %18 = arith.divf %16, %17 : vector<160x32xf32>
    %19 = arith.mulf %13, %18 : vector<160x32xf32>
    %20 = vector.shape_cast %19 : vector<160x32xf32> to vector<10x16x32xf32>
    %c8_i32_9 = arith.constant 8 : i32
    %21 = arith.muli %arg1, %c8_i32_9 : i32
    %c1_i32 = arith.constant 1 : i32
    %22 = arith.subi %21, %c1_i32 : i32
    %23 = tpu.iota {dimensions = array<i32: 0>} : vector<10x1x1xi32>
    %24 = vector.broadcast %22 : i32 to vector<10x1x1xi32>
    %25 = arith.addi %24, %23 : vector<10x1x1xi32>
    %c0_i32 = arith.constant 0 : i32
    %26 = vector.broadcast %c0_i32 : i32 to vector<10x1x1xi32>
    %27 = arith.cmpi sge, %25, %26 : vector<10x1x1xi32>
    %c16_i32 = arith.constant 16 : i32
    %28 = vector.broadcast %c16_i32 : i32 to vector<10x1x1xi32>
    %29 = arith.cmpi slt, %25, %28 : vector<10x1x1xi32>
    %30 = arith.andi %27, %29 : vector<10x1x1xi1>
    %cst_10 = arith.constant 0.000000e+00 : f32
    %31 = vector.shape_cast %30 : vector<10x1x1xi1> to vector<10x1x1xi1>
    %32 = vector.broadcast %31 : vector<10x1x1xi1> to vector<10x16x32xi1>
    %33 = vector.broadcast %cst_10 : f32 to vector<10x16x32xf32>
    %34 = arith.select %32, %20, %33 : vector<10x16x32xi1>, vector<10x16x32xf32>
    %cst_11 = arith.constant 0.000000e+00 : f32
    %35 = vector.broadcast %cst_11 : f32 to vector<10x18x32xf32>
    %c0_12 = arith.constant 0 : index
    %c0_13 = arith.constant 0 : index
    %c0_14 = arith.constant 0 : index
    %36 = vector.load %arg11[%c0_12, %c0_13, %c0_14] : memref<10x18x32xf32, #tpu.memory_space<vmem>>, vector<10x18x32xf32>
    tpu.vector_store %arg11[%c0_12, %c0_13, %c0_14], %35 {strides = array<i32>} : memref<10x18x32xf32, #tpu.memory_space<vmem>>, vector<10x18x32xf32>,
    %c0_15 = arith.constant 0 : index
    %c1 = arith.constant 1 : index
    %c0_16 = arith.constant 0 : index
    %37 = vector.load %arg11[%c0_15, %c1, %c0_16] : memref<10x18x32xf32, #tpu.memory_space<vmem>>, vector<10x16x32xf32>
    tpu.vector_store %arg11[%c0_15, %c1, %c0_16], %34 {strides = array<i32>} : memref<10x18x32xf32, #tpu.memory_space<vmem>>, vector<10x16x32xf32>,
    %c0_17 = arith.constant 0 : index
    %c0_18 = arith.constant 0 : index
    %c0_19 = arith.constant 0 : index
    %38 = vector.load %arg11[%c0_17, %c0_18, %c0_19] : memref<10x18x32xf32, #tpu.memory_space<vmem>>, vector<10x18x32xf32>
    %cst_20 = arith.constant 0.000000e+00 : f32
    %39 = vector.broadcast %cst_20 : f32 to vector<8x16x32xf32>
    %40 = vector.extract_strided_slice %38 {offsets = [0, 0, 0], sizes = [8, 16, 32], strides = [1, 1, 1]} : vector<10x18x32xf32> to vector<8x16x32xf32>
    %c0_21 = arith.constant 0 : index
    %c0_22 = arith.constant 0 : index
    %c0_23 = arith.constant 0 : index
    %c0_24 = arith.constant 0 : index
    %41 = vector.load %arg6[%c0_21, %c0_22, %c0_23, %c0_24] : memref<3x3x1x32xf32, #tpu.memory_space<vmem>>, vector<1x1x1x32xf32>
    %42 = vector.shape_cast %41 : vector<1x1x1x32xf32> to vector<1x32xf32>
    %43 = vector.shape_cast %42 : vector<1x32xf32> to vector<1x1x32xf32>
    %44 = vector.broadcast %43 : vector<1x1x32xf32> to vector<8x16x32xf32>
    %45 = arith.mulf %40, %44 : vector<8x16x32xf32>
    %46 = arith.addf %39, %45 : vector<8x16x32xf32>
    %47 = vector.extract_strided_slice %38 {offsets = [0, 1, 0], sizes = [8, 16, 32], strides = [1, 1, 1]} : vector<10x18x32xf32> to vector<8x16x32xf32>
    %c0_25 = arith.constant 0 : index
    %c1_26 = arith.constant 1 : index
    %c0_27 = arith.constant 0 : index
    %c0_28 = arith.constant 0 : index
    %48 = vector.load %arg6[%c0_25, %c1_26, %c0_27, %c0_28] : memref<3x3x1x32xf32, #tpu.memory_space<vmem>>, vector<1x1x1x32xf32>
    %49 = vector.shape_cast %48 : vector<1x1x1x32xf32> to vector<1x32xf32>
    %50 = vector.shape_cast %49 : vector<1x32xf32> to vector<1x1x32xf32>
    %51 = vector.broadcast %50 : vector<1x1x32xf32> to vector<8x16x32xf32>
    %52 = arith.mulf %47, %51 : vector<8x16x32xf32>
    %53 = arith.addf %46, %52 : vector<8x16x32xf32>
    %54 = vector.extract_strided_slice %38 {offsets = [0, 2, 0], sizes = [8, 16, 32], strides = [1, 1, 1]} : vector<10x18x32xf32> to vector<8x16x32xf32>
    %c0_29 = arith.constant 0 : index
    %c2 = arith.constant 2 : index
    %c0_30 = arith.constant 0 : index
    %c0_31 = arith.constant 0 : index
    %55 = vector.load %arg6[%c0_29, %c2, %c0_30, %c0_31] : memref<3x3x1x32xf32, #tpu.memory_space<vmem>>, vector<1x1x1x32xf32>
    %56 = vector.shape_cast %55 : vector<1x1x1x32xf32> to vector<1x32xf32>
    %57 = vector.shape_cast %56 : vector<1x32xf32> to vector<1x1x32xf32>
    %58 = vector.broadcast %57 : vector<1x1x32xf32> to vector<8x16x32xf32>
    %59 = arith.mulf %54, %58 : vector<8x16x32xf32>
    %60 = arith.addf %53, %59 : vector<8x16x32xf32>
    %61 = vector.extract_strided_slice %38 {offsets = [1, 0, 0], sizes = [8, 16, 32], strides = [1, 1, 1]} : vector<10x18x32xf32> to vector<8x16x32xf32>
    %c1_32 = arith.constant 1 : index
    %c0_33 = arith.constant 0 : index
    %c0_34 = arith.constant 0 : index
    %c0_35 = arith.constant 0 : index
    %62 = vector.load %arg6[%c1_32, %c0_33, %c0_34, %c0_35] : memref<3x3x1x32xf32, #tpu.memory_space<vmem>>, vector<1x1x1x32xf32>
    %63 = vector.shape_cast %62 : vector<1x1x1x32xf32> to vector<1x32xf32>
    %64 = vector.shape_cast %63 : vector<1x32xf32> to vector<1x1x32xf32>
    %65 = vector.broadcast %64 : vector<1x1x32xf32> to vector<8x16x32xf32>
    %66 = arith.mulf %61, %65 : vector<8x16x32xf32>
    %67 = arith.addf %60, %66 : vector<8x16x32xf32>
    %68 = vector.extract_strided_slice %38 {offsets = [1, 1, 0], sizes = [8, 16, 32], strides = [1, 1, 1]} : vector<10x18x32xf32> to vector<8x16x32xf32>
    %c1_36 = arith.constant 1 : index
    %c1_37 = arith.constant 1 : index
    %c0_38 = arith.constant 0 : index
    %c0_39 = arith.constant 0 : index
    %69 = vector.load %arg6[%c1_36, %c1_37, %c0_38, %c0_39] : memref<3x3x1x32xf32, #tpu.memory_space<vmem>>, vector<1x1x1x32xf32>
    %70 = vector.shape_cast %69 : vector<1x1x1x32xf32> to vector<1x32xf32>
    %71 = vector.shape_cast %70 : vector<1x32xf32> to vector<1x1x32xf32>
    %72 = vector.broadcast %71 : vector<1x1x32xf32> to vector<8x16x32xf32>
    %73 = arith.mulf %68, %72 : vector<8x16x32xf32>
    %74 = arith.addf %67, %73 : vector<8x16x32xf32>
    %75 = vector.extract_strided_slice %38 {offsets = [1, 2, 0], sizes = [8, 16, 32], strides = [1, 1, 1]} : vector<10x18x32xf32> to vector<8x16x32xf32>
    %c1_40 = arith.constant 1 : index
    %c2_41 = arith.constant 2 : index
    %c0_42 = arith.constant 0 : index
    %c0_43 = arith.constant 0 : index
    %76 = vector.load %arg6[%c1_40, %c2_41, %c0_42, %c0_43] : memref<3x3x1x32xf32, #tpu.memory_space<vmem>>, vector<1x1x1x32xf32>
    %77 = vector.shape_cast %76 : vector<1x1x1x32xf32> to vector<1x32xf32>
    %78 = vector.shape_cast %77 : vector<1x32xf32> to vector<1x1x32xf32>
    %79 = vector.broadcast %78 : vector<1x1x32xf32> to vector<8x16x32xf32>
    %80 = arith.mulf %75, %79 : vector<8x16x32xf32>
    %81 = arith.addf %74, %80 : vector<8x16x32xf32>
    %82 = vector.extract_strided_slice %38 {offsets = [2, 0, 0], sizes = [8, 16, 32], strides = [1, 1, 1]} : vector<10x18x32xf32> to vector<8x16x32xf32>
    %c2_44 = arith.constant 2 : index
    %c0_45 = arith.constant 0 : index
    %c0_46 = arith.constant 0 : index
    %c0_47 = arith.constant 0 : index
    %83 = vector.load %arg6[%c2_44, %c0_45, %c0_46, %c0_47] : memref<3x3x1x32xf32, #tpu.memory_space<vmem>>, vector<1x1x1x32xf32>
    %84 = vector.shape_cast %83 : vector<1x1x1x32xf32> to vector<1x32xf32>
    %85 = vector.shape_cast %84 : vector<1x32xf32> to vector<1x1x32xf32>
    %86 = vector.broadcast %85 : vector<1x1x32xf32> to vector<8x16x32xf32>
    %87 = arith.mulf %82, %86 : vector<8x16x32xf32>
    %88 = arith.addf %81, %87 : vector<8x16x32xf32>
    %89 = vector.extract_strided_slice %38 {offsets = [2, 1, 0], sizes = [8, 16, 32], strides = [1, 1, 1]} : vector<10x18x32xf32> to vector<8x16x32xf32>
    %c2_48 = arith.constant 2 : index
    %c1_49 = arith.constant 1 : index
    %c0_50 = arith.constant 0 : index
    %c0_51 = arith.constant 0 : index
    %90 = vector.load %arg6[%c2_48, %c1_49, %c0_50, %c0_51] : memref<3x3x1x32xf32, #tpu.memory_space<vmem>>, vector<1x1x1x32xf32>
    %91 = vector.shape_cast %90 : vector<1x1x1x32xf32> to vector<1x32xf32>
    %92 = vector.shape_cast %91 : vector<1x32xf32> to vector<1x1x32xf32>
    %93 = vector.broadcast %92 : vector<1x1x32xf32> to vector<8x16x32xf32>
    %94 = arith.mulf %89, %93 : vector<8x16x32xf32>
    %95 = arith.addf %88, %94 : vector<8x16x32xf32>
    %96 = vector.extract_strided_slice %38 {offsets = [2, 2, 0], sizes = [8, 16, 32], strides = [1, 1, 1]} : vector<10x18x32xf32> to vector<8x16x32xf32>
    %c2_52 = arith.constant 2 : index
    %c2_53 = arith.constant 2 : index
    %c0_54 = arith.constant 0 : index
    %c0_55 = arith.constant 0 : index
    %97 = vector.load %arg6[%c2_52, %c2_53, %c0_54, %c0_55] : memref<3x3x1x32xf32, #tpu.memory_space<vmem>>, vector<1x1x1x32xf32>
    %98 = vector.shape_cast %97 : vector<1x1x1x32xf32> to vector<1x32xf32>
    %99 = vector.shape_cast %98 : vector<1x32xf32> to vector<1x1x32xf32>
    %100 = vector.broadcast %99 : vector<1x1x32xf32> to vector<8x16x32xf32>
    %101 = arith.mulf %96, %100 : vector<8x16x32xf32>
    %102 = arith.addf %95, %101 : vector<8x16x32xf32>
    %c0_56 = arith.constant 0 : index
    %c0_57 = arith.constant 0 : index
    %103 = vector.load %arg7[%c0_56, %c0_57] : memref<1x32xf32, #tpu.memory_space<vmem>>, vector<1x32xf32>
    %104 = vector.shape_cast %103 : vector<1x32xf32> to vector<1x1x32xf32>
    %105 = vector.broadcast %104 : vector<1x1x32xf32> to vector<8x16x32xf32>
    %106 = arith.mulf %102, %105 : vector<8x16x32xf32>
    %c0_58 = arith.constant 0 : index
    %c0_59 = arith.constant 0 : index
    %107 = vector.load %arg8[%c0_58, %c0_59] : memref<1x32xf32, #tpu.memory_space<vmem>>, vector<1x32xf32>
    %108 = vector.shape_cast %107 : vector<1x32xf32> to vector<1x1x32xf32>
    %109 = vector.broadcast %108 : vector<1x1x32xf32> to vector<8x16x32xf32>
    %110 = arith.addf %106, %109 : vector<8x16x32xf32>
    %111 = arith.negf %110 : vector<8x16x32xf32>
    %112 = math.exp %111 : vector<8x16x32xf32>
    %cst_60 = arith.constant 1.000000e+00 : f32
    %113 = vector.broadcast %cst_60 : f32 to vector<8x16x32xf32>
    %114 = arith.addf %113, %112 : vector<8x16x32xf32>
    %115 = arith.divf %113, %114 : vector<8x16x32xf32>
    %116 = arith.mulf %110, %115 : vector<8x16x32xf32>
    %117 = arith.truncf %116 : vector<8x16x32xf32> to vector<8x16x32xbf16>
    %c0_61 = arith.constant 0 : index
    %c0_62 = arith.constant 0 : index
    %c0_63 = arith.constant 0 : index
    %c0_64 = arith.constant 0 : index
    %118 = vector.load %arg9[%c0_61, %c0_62, %c0_63, %c0_64] : memref<1x8x16x32xbf16, #tpu.memory_space<vmem>>, vector<1x8x16x32xbf16>
    %119 = vector.shape_cast %118 : vector<1x8x16x32xbf16> to vector<8x16x32xbf16>
    %120 = vector.shape_cast %117 : vector<8x16x32xbf16> to vector<1x8x16x32xbf16>
    tpu.vector_store %arg9[%c0_61, %c0_62, %c0_63, %c0_64], %120 {strides = array<i32>} : memref<1x8x16x32xbf16, #tpu.memory_space<vmem>>, vector<1x8x16x32xbf16>,
    %c0_i32_65 = arith.constant 0 : i32
    %121 = arith.cmpi eq, %arg1, %c0_i32_65 : i32
    %122 = arith.extui %121 : i1 to i32
    %c0_i32_66 = arith.constant 0 : i32
    %123 = arith.cmpi ne, %122, %c0_i32_66 : i32
    scf.if %123 {
      %cst_74 = arith.constant 0.000000e+00 : f32
      %131 = vector.broadcast %cst_74 : f32 to vector<1x1x32xf32>
      %c0_75 = arith.constant 0 : index
      %c0_76 = arith.constant 0 : index
      %c0_77 = arith.constant 0 : index
      %132 = vector.load %arg10[%c0_75, %c0_76, %c0_77] : memref<1x1x32xf32, #tpu.memory_space<vmem>>, vector<1x1x32xf32>
      tpu.vector_store %arg10[%c0_75, %c0_76, %c0_77], %131 {strides = array<i32>} : memref<1x1x32xf32, #tpu.memory_space<vmem>>, vector<1x1x32xf32>,
    } else {
    }
    %c0_67 = arith.constant 0 : index
    %c0_68 = arith.constant 0 : index
    %c0_69 = arith.constant 0 : index
    %124 = vector.load %arg10[%c0_67, %c0_68, %c0_69] : memref<1x1x32xf32, #tpu.memory_space<vmem>>, vector<1x1x32xf32>
    %125 = vector.shape_cast %116 : vector<8x16x32xf32> to vector<128x32xf32>
    %cst_70 = arith.constant dense<0.000000e+00> : vector<32xf32>
    %126 = vector.multi_reduction <add>, %125, %cst_70 [0] : vector<128x32xf32> to vector<32xf32>
    %127 = vector.shape_cast %126 : vector<32xf32> to vector<1x32xf32>
    %128 = vector.shape_cast %127 : vector<1x32xf32> to vector<1x1x32xf32>
    %129 = arith.addf %124, %128 : vector<1x1x32xf32>
    %c0_71 = arith.constant 0 : index
    %c0_72 = arith.constant 0 : index
    %c0_73 = arith.constant 0 : index
    %130 = vector.load %arg10[%c0_71, %c0_72, %c0_73] : memref<1x1x32xf32, #tpu.memory_space<vmem>>, vector<1x1x32xf32>
    tpu.vector_store %arg10[%c0_71, %c0_72, %c0_73], %129 {strides = array<i32>} : memref<1x1x32xf32, #tpu.memory_space<vmem>>, vector<1x1x32xf32>,
    return
  }
  func.func @transform_0(%arg0: i32, %arg1: i32) -> (i32, i32, i32, i32) {
    %c0_i32 = arith.constant 0 : i32
    %c0_i32_0 = arith.constant 0 : i32
    %c0_i32_1 = arith.constant 0 : i32
    %c0_i32_2 = arith.constant 0 : i32
    return %arg0, %c0_i32, %c0_i32_0, %c0_i32_1 : i32, i32, i32, i32
  }
  func.func @transform_1(%arg0: i32, %arg1: i32) -> (i32, i32) {
    %c0_i32 = arith.constant 0 : i32
    %c0_i32_0 = arith.constant 0 : i32
    %c0_i32_1 = arith.constant 0 : i32
    return %c0_i32, %c0_i32_0 : i32, i32
  }
  func.func @transform_2(%arg0: i32, %arg1: i32) -> (i32, i32) {
    %c0_i32 = arith.constant 0 : i32
    %c0_i32_0 = arith.constant 0 : i32
    %c0_i32_1 = arith.constant 0 : i32
    return %c0_i32, %c0_i32_0 : i32, i32
  }
  func.func @transform_3(%arg0: i32, %arg1: i32) -> (i32, i32) {
    %c0_i32 = arith.constant 0 : i32
    %c0_i32_0 = arith.constant 0 : i32
    %c0_i32_1 = arith.constant 0 : i32
    return %c0_i32, %c0_i32_0 : i32, i32
  }
  func.func @transform_4(%arg0: i32, %arg1: i32) -> (i32, i32, i32, i32) {
    %c0_i32 = arith.constant 0 : i32
    %c0_i32_0 = arith.constant 0 : i32
    %c0_i32_1 = arith.constant 0 : i32
    %c0_i32_2 = arith.constant 0 : i32
    %c0_i32_3 = arith.constant 0 : i32
    return %c0_i32, %c0_i32_0, %c0_i32_1, %c0_i32_2 : i32, i32, i32, i32
  }
  func.func @transform_5(%arg0: i32, %arg1: i32) -> (i32, i32) {
    %c0_i32 = arith.constant 0 : i32
    %c0_i32_0 = arith.constant 0 : i32
    %c0_i32_1 = arith.constant 0 : i32
    return %c0_i32, %c0_i32_0 : i32, i32
  }
  func.func @transform_6(%arg0: i32, %arg1: i32) -> (i32, i32) {
    %c0_i32 = arith.constant 0 : i32
    %c0_i32_0 = arith.constant 0 : i32
    %c0_i32_1 = arith.constant 0 : i32
    return %c0_i32, %c0_i32_0 : i32, i32
  }
  func.func @transform_7(%arg0: i32, %arg1: i32) -> (i32, i32, i32, i32) {
    %c0_i32 = arith.constant 0 : i32
    %c0_i32_0 = arith.constant 0 : i32
    %c0_i32_1 = arith.constant 0 : i32
    return %arg0, %arg1, %c0_i32, %c0_i32_0 : i32, i32, i32, i32
  }
  func.func @transform_8(%arg0: i32, %arg1: i32) -> (i32, i32, i32) {
    %c0_i32 = arith.constant 0 : i32
    %c0_i32_0 = arith.constant 0 : i32
    %c0_i32_1 = arith.constant 0 : i32
    return %arg0, %c0_i32, %c0_i32_0 : i32, i32, i32
  }
}

module attributes {stable_mosaic.version = 11 : i64} {
  func.func @se_gate_kernel(%arg0: memref<2x32xf32, #tpu.memory_space<vmem>>, %arg1: memref<32x2xf32, #tpu.memory_space<vmem>>, %arg2: memref<1x2xf32, #tpu.memory_space<vmem>>, %arg3: memref<2x32xf32, #tpu.memory_space<vmem>>, %arg4: memref<1x32xf32, #tpu.memory_space<vmem>>, %arg5: memref<2x32xf32, #tpu.memory_space<vmem>>) attributes {dimension_semantics = [], scalar_prefetch = 0 : i64, scratch_operands = 0 : i64, tpu.core_type = #tpu.core_type<tc>} {
    %c0 = arith.constant 0 : index
    %c0_0 = arith.constant 0 : index
    %0 = vector.load %arg0[%c0, %c0_0] : memref<2x32xf32, #tpu.memory_space<vmem>>, vector<2x32xf32>
    %cst = arith.constant 3.906250e-03 : f32
    %1 = vector.broadcast %cst : f32 to vector<2x32xf32>
    %2 = arith.mulf %0, %1 : vector<2x32xf32>
    %c0_1 = arith.constant 0 : index
    %c0_2 = arith.constant 0 : index
    %3 = vector.load %arg1[%c0_1, %c0_2] : memref<32x2xf32, #tpu.memory_space<vmem>>, vector<32x2xf32>
    %cst_3 = arith.constant dense<0.000000e+00> : vector<2x2xf32>
    %4 = tpu.matmul %2, %3, %cst_3 {dimension_numbers = #tpu.dot_dimension_numbers<[1], [0], [0], [1], [0, 0, 1, 1], [], []>} : vector<2x32xf32>, vector<32x2xf32>, vector<2x2xf32> -> vector<2x2xf32>
    %c0_4 = arith.constant 0 : index
    %c0_5 = arith.constant 0 : index
    %5 = vector.load %arg2[%c0_4, %c0_5] : memref<1x2xf32, #tpu.memory_space<vmem>>, vector<1x2xf32>
    %6 = vector.broadcast %5 : vector<1x2xf32> to vector<2x2xf32>
    %7 = arith.addf %4, %6 : vector<2x2xf32>
    %8 = arith.negf %7 : vector<2x2xf32>
    %9 = math.exp %8 : vector<2x2xf32>
    %cst_6 = arith.constant 1.000000e+00 : f32
    %10 = vector.broadcast %cst_6 : f32 to vector<2x2xf32>
    %11 = arith.addf %10, %9 : vector<2x2xf32>
    %12 = arith.divf %10, %11 : vector<2x2xf32>
    %13 = arith.mulf %7, %12 : vector<2x2xf32>
    %c0_7 = arith.constant 0 : index
    %c0_8 = arith.constant 0 : index
    %14 = vector.load %arg3[%c0_7, %c0_8] : memref<2x32xf32, #tpu.memory_space<vmem>>, vector<2x32xf32>
    %cst_9 = arith.constant dense<0.000000e+00> : vector<2x32xf32>
    %15 = tpu.matmul %13, %14, %cst_9 {dimension_numbers = #tpu.dot_dimension_numbers<[1], [0], [0], [1], [0, 0, 1, 1], [], []>} : vector<2x2xf32>, vector<2x32xf32>, vector<2x32xf32> -> vector<2x32xf32>
    %c0_10 = arith.constant 0 : index
    %c0_11 = arith.constant 0 : index
    %16 = vector.load %arg4[%c0_10, %c0_11] : memref<1x32xf32, #tpu.memory_space<vmem>>, vector<1x32xf32>
    %17 = vector.broadcast %16 : vector<1x32xf32> to vector<2x32xf32>
    %18 = arith.addf %15, %17 : vector<2x32xf32>
    %19 = arith.negf %18 : vector<2x32xf32>
    %20 = math.exp %19 : vector<2x32xf32>
    %cst_12 = arith.constant 1.000000e+00 : f32
    %21 = vector.broadcast %cst_12 : f32 to vector<2x32xf32>
    %22 = arith.addf %21, %20 : vector<2x32xf32>
    %23 = arith.divf %21, %22 : vector<2x32xf32>
    %c0_13 = arith.constant 0 : index
    %c0_14 = arith.constant 0 : index
    %24 = vector.load %arg5[%c0_13, %c0_14] : memref<2x32xf32, #tpu.memory_space<vmem>>, vector<2x32xf32>
    tpu.vector_store %arg5[%c0_13, %c0_14], %23 {strides = array<i32>} : memref<2x32xf32, #tpu.memory_space<vmem>>, vector<2x32xf32>,
    return
  }
}

module attributes {stable_mosaic.version = 11 : i64} {
  func.func @gate_project_kernel(%arg0: i32, %arg1: i32, %arg2: memref<1x8x16x32xbf16, #tpu.memory_space<vmem>>, %arg3: memref<1x1x32xf32, #tpu.memory_space<vmem>>, %arg4: memref<8x32xf32, #tpu.memory_space<vmem>>, %arg5: memref<8x1xf32, #tpu.memory_space<vmem>>, %arg6: memref<8x1xf32, #tpu.memory_space<vmem>>, %arg7: memref<1x8x128xf32, #tpu.memory_space<vmem>>, %arg8: memref<1x8x128xf32, #tpu.memory_space<vmem>>) attributes {dimension_semantics = [#tpu.dimension_semantics<parallel>, #tpu.dimension_semantics<parallel>], iteration_bounds = array<i64: 2, 2>, scalar_prefetch = 0 : i64, scratch_operands = 0 : i64, tpu.core_type = #tpu.core_type<tc>, window_params = [{transform_indices = @transform_0, window_bounds = array<i64: 1, 8, 16, 32>}, {transform_indices = @transform_1, window_bounds = array<i64: 1, 1, 32>}, {pipeline_mode = #tpu.pipeline_mode<synchronous>, transform_indices = @transform_2, window_bounds = array<i64: 8, 32>}, {pipeline_mode = #tpu.pipeline_mode<synchronous>, transform_indices = @transform_3, window_bounds = array<i64: 8, 1>}, {pipeline_mode = #tpu.pipeline_mode<synchronous>, transform_indices = @transform_4, window_bounds = array<i64: 8, 1>}, {transform_indices = @transform_5, window_bounds = array<i64: 1, 8, 128>}, {transform_indices = @transform_6, window_bounds = array<i64: 1, 8, 128>}]} {
    %c0 = arith.constant 0 : index
    %c0_0 = arith.constant 0 : index
    %c0_1 = arith.constant 0 : index
    %c0_2 = arith.constant 0 : index
    %0 = vector.load %arg2[%c0, %c0_0, %c0_1, %c0_2] : memref<1x8x16x32xbf16, #tpu.memory_space<vmem>>, vector<1x8x16x32xbf16>
    %1 = vector.shape_cast %0 : vector<1x8x16x32xbf16> to vector<8x16x32xbf16>
    %2 = arith.extf %1 : vector<8x16x32xbf16> to vector<8x16x32xf32>
    %3 = vector.shape_cast %2 : vector<8x16x32xf32> to vector<128x32xf32>
    %c0_3 = arith.constant 0 : index
    %c0_4 = arith.constant 0 : index
    %c0_5 = arith.constant 0 : index
    %4 = vector.load %arg3[%c0_3, %c0_4, %c0_5] : memref<1x1x32xf32, #tpu.memory_space<vmem>>, vector<1x1x32xf32>
    %5 = vector.shape_cast %4 : vector<1x1x32xf32> to vector<1x32xf32>
    %6 = vector.broadcast %5 : vector<1x32xf32> to vector<128x32xf32>
    %7 = arith.mulf %3, %6 : vector<128x32xf32>
    %c0_6 = arith.constant 0 : index
    %c0_7 = arith.constant 0 : index
    %8 = vector.load %arg4[%c0_6, %c0_7] : memref<8x32xf32, #tpu.memory_space<vmem>>, vector<8x32xf32>
    %cst = arith.constant dense<0.000000e+00> : vector<8x128xf32>
    %9 = tpu.matmul %8, %7, %cst {dimension_numbers = #tpu.dot_dimension_numbers<[1], [1], [0], [0], [0, 0, 1, 0], [], []>} : vector<8x32xf32>, vector<128x32xf32>, vector<8x128xf32> -> vector<8x128xf32>
    %c0_8 = arith.constant 0 : index
    %c0_9 = arith.constant 0 : index
    %10 = vector.load %arg5[%c0_8, %c0_9] : memref<8x1xf32, #tpu.memory_space<vmem>>, vector<8x1xf32>
    %11 = vector.broadcast %10 : vector<8x1xf32> to vector<8x128xf32>
    %12 = arith.mulf %9, %11 : vector<8x128xf32>
    %c0_10 = arith.constant 0 : index
    %c0_11 = arith.constant 0 : index
    %13 = vector.load %arg6[%c0_10, %c0_11] : memref<8x1xf32, #tpu.memory_space<vmem>>, vector<8x1xf32>
    %14 = vector.broadcast %13 : vector<8x1xf32> to vector<8x128xf32>
    %15 = arith.addf %12, %14 : vector<8x128xf32>
    %c0_12 = arith.constant 0 : index
    %c0_13 = arith.constant 0 : index
    %c0_14 = arith.constant 0 : index
    %16 = vector.load %arg7[%c0_12, %c0_13, %c0_14] : memref<1x8x128xf32, #tpu.memory_space<vmem>>, vector<1x8x128xf32>
    %17 = vector.shape_cast %16 : vector<1x8x128xf32> to vector<8x128xf32>
    %18 = arith.addf %15, %17 : vector<8x128xf32>
    %c0_15 = arith.constant 0 : index
    %c0_16 = arith.constant 0 : index
    %c0_17 = arith.constant 0 : index
    %19 = vector.load %arg8[%c0_15, %c0_16, %c0_17] : memref<1x8x128xf32, #tpu.memory_space<vmem>>, vector<1x8x128xf32>
    %20 = vector.shape_cast %19 : vector<1x8x128xf32> to vector<8x128xf32>
    %21 = vector.shape_cast %18 : vector<8x128xf32> to vector<1x8x128xf32>
    tpu.vector_store %arg8[%c0_15, %c0_16, %c0_17], %21 {strides = array<i32>} : memref<1x8x128xf32, #tpu.memory_space<vmem>>, vector<1x8x128xf32>,
    return
  }
  func.func @transform_0(%arg0: i32, %arg1: i32) -> (i32, i32, i32, i32) {
    %c0_i32 = arith.constant 0 : i32
    %c0_i32_0 = arith.constant 0 : i32
    %c0_i32_1 = arith.constant 0 : i32
    return %arg0, %arg1, %c0_i32, %c0_i32_0 : i32, i32, i32, i32
  }
  func.func @transform_1(%arg0: i32, %arg1: i32) -> (i32, i32, i32) {
    %c0_i32 = arith.constant 0 : i32
    %c0_i32_0 = arith.constant 0 : i32
    %c0_i32_1 = arith.constant 0 : i32
    return %arg0, %c0_i32, %c0_i32_0 : i32, i32, i32
  }
  func.func @transform_2(%arg0: i32, %arg1: i32) -> (i32, i32) {
    %c0_i32 = arith.constant 0 : i32
    %c0_i32_0 = arith.constant 0 : i32
    %c0_i32_1 = arith.constant 0 : i32
    return %c0_i32, %c0_i32_0 : i32, i32
  }
  func.func @transform_3(%arg0: i32, %arg1: i32) -> (i32, i32) {
    %c0_i32 = arith.constant 0 : i32
    %c0_i32_0 = arith.constant 0 : i32
    %c0_i32_1 = arith.constant 0 : i32
    return %c0_i32, %c0_i32_0 : i32, i32
  }
  func.func @transform_4(%arg0: i32, %arg1: i32) -> (i32, i32) {
    %c0_i32 = arith.constant 0 : i32
    %c0_i32_0 = arith.constant 0 : i32
    %c0_i32_1 = arith.constant 0 : i32
    return %c0_i32, %c0_i32_0 : i32, i32
  }
  func.func @transform_5(%arg0: i32, %arg1: i32) -> (i32, i32, i32) {
    %c0_i32 = arith.constant 0 : i32
    %c0_i32_0 = arith.constant 0 : i32
    return %arg0, %c0_i32, %arg1 : i32, i32, i32
  }
  func.func @transform_6(%arg0: i32, %arg1: i32) -> (i32, i32, i32) {
    %c0_i32 = arith.constant 0 : i32
    %c0_i32_0 = arith.constant 0 : i32
    return %arg0, %c0_i32, %arg1 : i32, i32, i32
  }
}

</mosaic_0001>

<bundles_post_ra>
// kernel: mb_expand_conv_block.4
= control target key start
LH: loop header
LB: loop body
LE: loop exit
PB: predicated region body
PF: predicated region fallthrough
CT: control target
= control target key end

     0   :  { %v252_v0 = vmov 0.0   ;;  %vm253_vm0 = vmmov 0   ;;  %vm33_vm1 = vcmask 261120   ;;  %vm126_vm2 = vcmask 1041408   ;;  %s311_s1 = inlined_call_operand.vmem [shape: f32[32,2], index: 1, kind: input, shape index: {}]   ;;  %s312_s0 = inlined_call_operand.vmem [shape: f32[2,32], index: 0, kind: input, shape index: {}]   ;;  %s313_s3 = inlined_call_operand.vmem [shape: f32[2,32], index: 3, kind: input, shape index: {}]   ;;  %s314_s2 = inlined_call_operand.vmem [shape: f32[1,2], index: 2, kind: input, shape index: {}]   ;;  %s315_s4 = inlined_call_operand.vmem [shape: f32[1,32], index: 4, kind: input, shape index: {}]   ;;  %s316_s5 = inlined_call_operand.vmem [shape: f32[2,32], index: 5, kind: output, shape index: {}]  }
   0x1   :  { %226 = vmatprep.subr.mxu0 %v252_v0  ;;  %v25_v1 = vld [vmem:[%s311_s1 + $0x18] sm:$0xff]  ;;  %v24_v2 = vld [vmem:[%s311_s1 + $0x10] sm:$0xff]  ;;  %234 = vmatprep.mubr.msk.f32.mxu0 %vm253_vm0, %v252_v0  ;;  %v20_v3 = vld [vmem:[%s312_s0] sm:$0x3]  ;;  %vm122_vm3 = vcmask 15360   ;;  %vm206_vm4 = vcmask 254976  }
   0x2   :  { %227 = vmatpush3.msra.mxu0 %v25_v1  ;;  %237 = vmatprep.subr.mxu1 %v252_v0  ;;  %v23_v4 = vld [vmem:[%s311_s1 + $0x8] sm:$0xff]  ;;  %v22_v5 = vld [vmem:[%s311_s1] sm:$0xff]  ;;  %v21_v6 = vmul.f32 0.00390625, %v20_v3 }
   0x3   :  { %228 = vmatprep.subr.mxu0 %v252_v0  ;;  %239 = vmatprep.mubr.msk.f32.mxu1 %vm253_vm0, %v252_v0  ;;  %v114_v7 = vld [vmem:[%s313_s3] sm:$0x3] }
   0x4   :  { %229 = vmatpush3.msra.mxu0 %v24_v2  ;;  %238 = vmatpush3.msk.msra.mxu1 %vm126_vm2, %v114_v7  ;;  %v212_v8 = vld [vmem:[%s314_s2] ss:$0 sm:$0xff] }
   0x5   :  { %230 = vmatprep.subr.mxu0 %v252_v0  ;;  %v215_v17 = vld [vmem:[%s315_s4] ss:$0 sm:$0xff] }
   0x6   :  { %231 = vmatpush3.msra.mxu0 %v23_v4 }
   0x7   :  { %232 = vmatprep.subr.mxu0 %v252_v0 }
   0x8   :  { %233 = vmatpush3.msra.mxu0 %v22_v5 }
   0x9   :  { %235 = vmatmul.mubr.msk.f32.vlgmr.msra.gmra.mxu0 %vm33_vm1, %v21_v6 }
  0xc9   :  { %v103_v9 = vpop.f32.mrf.mxu0 }
  0xca   :  { %v104_v10 = vadd.f32 %v212_v8, %v103_v9 }
  0xcb   :  { %v236_v11 = vpop.f32.mrf.mxu0 }
  0xcc   :  { %v214_v12 = vmul.f32 -1.442695, %v104_v10 }
  0xce   :  { %244 = vpow2.f32 %v214_v12 }
  0xdb   :  { %v245_v13 = vpop.eup %244 }
  0xdc   :  { %v110_v14 = vadd.f32 1.0, %v245_v13 }
  0xde   :  { %246 = vrcp.f32 %v110_v14 }
  0xeb   :  { %v247_v15 = vpop.eup %246 }
  0xec   :  { %v113_v16 = vmul.f32 %v247_v15, %v104_v10 }
  0xee   :  { %240 = vmatmul.mubr.msk.f32.vlgmr.msra.gmra.mxu1 %vm122_vm3, %v113_v16 }
 0x1ae   :  { %v196_v18 = vpop.f32.mrf.mxu1 }
 0x1af   :  { %v197_v19 = vadd.f32 %v215_v17, %v196_v18 }
 0x1b0   :  { %v241_v20 = vpop.f32.mrf.mxu1 }
 0x1b1   :  { %v218_v21 = vmul.f32 -1.442695, %v197_v19 }
 0x1b3   :  { %248 = vpow2.f32 %v218_v21 }
 0x1c0   :  { %v249_v22 = vpop.eup %248 }
 0x1c1   :  { %v203_v23 = vadd.f32 1.0, %v249_v22 }
 0x1c3   :  { %250 = vrcp.f32 %v203_v23 }
 0x1d0   :  { %v251_v24 = vpop.eup %250 }
 0x1d1   :  { %207 = vst.msk [vmem:[%s316_s5] sm:$0x3] %vm206_vm4, %v251_v24 }

// kernel: mb_expand_conv_block.5
= control target key start
LH: loop header
LB: loop body
LE: loop exit
PB: predicated region body
PF: predicated region fallthrough
CT: control target
= control target key end

     0   :  { %s893_s21 = smov 0   ;;  %s895_s22 = smov 0   ;;  %s1031_s0 = inlined_call_operand.vmem [shape: bf16[2,16,16,32], index: 0, kind: input, shape index: {}]   ;;  %s1032_s1 = inlined_call_operand.vmem [shape: f32[2,1,32], index: 1, kind: input, shape index: {}]   ;;  %s1033_s2 = inlined_call_operand.vmem [shape: f32[8,32], index: 2, kind: input, shape index: {}]   ;;  %s1034_s3 = inlined_call_operand.vmem [shape: f32[8,1], index: 3, kind: input, shape index: {}]   ;;  %s1035_s4 = inlined_call_operand.vmem [shape: f32[8,1], index: 4, kind: input, shape index: {}]   ;;  %s1036_s5 = inlined_call_operand.vmem [shape: f32[2,8,256], index: 5, kind: input, shape index: {}]   ;;  %s1037_s6 = inlined_call_operand.vmem [shape: f32[2,8,256], index: 6, kind: output, shape index: {}]  }
   0x1   :  { %s897_s23 = smov 0   ;;  %s899_s24 = smov 0  }
   0x2   :  { %s901_s25 = smov 0  }
   0x3 LB: > { %s25_s26 = sadd.s32 1, %s845_s23  ;;  %s28_s27 = sadd.s32 1, %s849_s24  ;;  %s853_s25 = sphi %s901_s25, %s16_s25   ;;  %s849_s24 = sphi %s899_s24, %s1041_s24   ;;  %s845_s23 = sphi %s897_s23, %s1040_s23   ;;  %s841_s22 = sphi %s895_s22, %s1039_s22   ;;  %s837_s21 = sphi %s893_s21, %s1038_s21  }
   0x4   : > { %p26_p0 = scmp.ge.s32.totalorder %s25_s26, 2  ;;  %p651_p1 = scmp.ge.s32.totalorder %s853_s25, 1 }
   0x5   : > { %p257_p2 = scmp.lt.s32.totalorder %s853_s25, 5 }
   0x6   : > { %s1043_s26 = smov (%p26_p0, %s25_s26), 0  ;;  %s1045_s27 = smov (!%p26_p0, %s28_s27), %s849_s24 }
   0x7   : > { %p258_p3 = pnand %p651_p1, %p257_p2  ;;  %p30_p4 = scmp.ge.s32.totalorder %s1045_s27, 2 }
   0x8   : > { %s652_s28 = sshll.u32 (!%p258_p3), %s837_s21, 3  ;;  %p307_p5 = scmp.lt.s32.totalorder (!%p258_p3), %s841_s22, 1 }
   0x9   : > { %s1047_s27 = smov (%p30_p4, %s1045_s27), 0  ;;  %261 = sbr.rel (%p258_p3) target bundleno = 287 (0x11f), region = 44 }
   0xa   : > { %p309_p6 = scmp.lt.s32.totalorder (!%p258_p3), %s652_s28, 15  ;;  %p322_p7 = scmp.lt.s32.totalorder (!%p258_p3), %s837_s21, 1 }
   0xe   : > { %v855_v0 = vmov 0.0   ;;  %vm856_vm0 = vmmov 0   ;;  %v514_v1 = vld [vmem:[%s1034_s3] sm:$0xff]  ;;  %s1049_s22 = smov (!%p307_p5, %s841_s22), 1  ;;  %v857_v2 = vmov 0   ;;  %s1051_s28 = smov (!%p309_p6, %s652_s28), 15 }
   0xf   : > { %736 = vmatprep.subr.mxu0 %v855_v0  ;;  %768 = vmatprep.mubr.msk.f32.mxu0 %vm856_vm0, %v855_v0  ;;  %s654_s7 = sshll.u32 %s1049_s22, 5  ;;  %v521_v3 = vld [vmem:[%s1035_s4] sm:$0xff]  ;;  %s653_s10 = sshll.u32 %s1051_s28, 1  ;;  %vm392_vm1 = vcmask 261120  }
  0x10   : > { %814 = vset.pattern.permute.xlu0 %v857_v2  ;;  %s313_s11 = sadd.s32 %s654_s7, %s653_s10  ;;  %s319_s14 = scalar_lea.vmem %s1032_s1, %s1049_s22  ;;  %v391_v45 = vld [vmem:[%s1033_s2] sm:$0xff] }
  0x11   : > { %517 = vperm.xlu0 %814, %v514_v1   ;;  %s655_s15 = sshll.u32 %s313_s11, 2  ;;  %v947_v5 = vld [vmem:[%s319_s14] ss:$0 sm:$0xff]  ;;  %s1053_s21 = smov (!%p322_p7, %s837_s21), 1 }
  0x12   : > { %s944_s18 = scalar_lea.vmem %s1031_s0, %s655_s15  ;;  %s656_s28 = sshll.u32 %s1049_s22, 1 }
  0x13   : > { %v718_v4 = vld [vmem:[%s944_s18 + $0x38] sm:$0xff]   ;;  %v717_v8 = vld [vmem:[%s944_s18 + $0x30] sm:$0xff]   ;;  %v716_v14 = vld [vmem:[%s944_s18 + $0x28] sm:$0xff]   ;;  %s325_s29 = sadd.s32 %s656_s28, %s1053_s21 }
  0x14   : > { %v710_v6 = vunpack.c.l.bf16 %v718_v4  ;;  %v711_v7 = vunpack.c.h.bf16 %v718_v4  ;;  %v707_v11 = vunpack.c.h.bf16 %v717_v8  ;;  %v706_v13 = vunpack.c.l.bf16 %v717_v8  ;;  %v715_v19 = vld [vmem:[%s944_s18 + $0x20] sm:$0xff]   ;;  %v714_v24 = vld [vmem:[%s944_s18 + $0x18] sm:$0xff]   ;;  %v713_v29 = vld [vmem:[%s944_s18 + $0x10] sm:$0xff]   ;;  %s657_s30 = sshll.u32 %s325_s29, 3 }
  0x15   : > { %524 = vperm.xlu0 %814, %v521_v3   ;;  %v703_v16 = vunpack.c.h.bf16 %v716_v14  ;;  %v702_v18 = vunpack.c.l.bf16 %v716_v14  ;;  %v699_v21 = vunpack.c.h.bf16 %v715_v19  ;;  %v698_v23 = vunpack.c.l.bf16 %v715_v19  ;;  %v712_v34 = vld [vmem:[%s944_s18 + $0x8] sm:$0xff]   ;;  %v681_v39 = vld [vmem:[%s944_s18] sm:$0xff]   ;;  %s327_s9 = scalar_lea.vmem %s1036_s5, %s657_s30  ;;  %s335_s12 = scalar_lea.vmem %s1037_s6, %s657_s30 }
  0x16   : > { %v390_v9 = vmul.f32 %v711_v7, %v947_v5  ;;  %v389_v10 = vmul.f32 %v710_v6, %v947_v5  ;;  %v388_v12 = vmul.f32 %v707_v11, %v947_v5  ;;  %v387_v15 = vmul.f32 %v706_v13, %v947_v5  ;;  %v528_v50 = vld [vmem:[%s327_s9] sm:$0xff] }
  0x17   : > { %v386_v17 = vmul.f32 %v703_v16, %v947_v5  ;;  %v385_v20 = vmul.f32 %v702_v18, %v947_v5  ;;  %v384_v22 = vmul.f32 %v699_v21, %v947_v5  ;;  %v383_v25 = vmul.f32 %v698_v23, %v947_v5 }
  0x18   : > { %737 = vmatpush3.xpose.msk.msra.mxu0 %vm392_vm1, %v390_v9  ;;  %v695_v26 = vunpack.c.h.bf16 %v714_v24  ;;  %v694_v28 = vunpack.c.l.bf16 %v714_v24  ;;  %v691_v31 = vunpack.c.h.bf16 %v713_v29  ;;  %v690_v33 = vunpack.c.l.bf16 %v713_v29 }
  0x19   : > { %738 = vmatprep.subr.mxu0 %v855_v0  ;;  %v687_v36 = vunpack.c.h.bf16 %v712_v34  ;;  %v686_v38 = vunpack.c.l.bf16 %v712_v34  ;;  %v683_v41 = vunpack.c.h.bf16 %v681_v39  ;;  %v682_v43 = vunpack.c.l.bf16 %v681_v39 }
  0x1a   : > { %v382_v27 = vmul.f32 %v695_v26, %v947_v5  ;;  %v381_v30 = vmul.f32 %v694_v28, %v947_v5  ;;  %v380_v32 = vmul.f32 %v691_v31, %v947_v5  ;;  %v379_v35 = vmul.f32 %v690_v33, %v947_v5 }
  0x1b   : > { %v378_v37 = vmul.f32 %v687_v36, %v947_v5  ;;  %v377_v40 = vmul.f32 %v686_v38, %v947_v5  ;;  %v376_v42 = vmul.f32 %v683_v41, %v947_v5  ;;  %v375_v44 = vmul.f32 %v682_v43, %v947_v5 }
  0x1c   : > { %739 = vmatpush3.xpose.msk.msra.mxu0 %vm392_vm1, %v389_v10 }
  0x1d   : > { %740 = vmatprep.subr.mxu0 %v855_v0 }
  0x20   : > { %741 = vmatpush3.xpose.msk.msra.mxu0 %vm392_vm1, %v388_v12 }
  0x21   : > { %742 = vmatprep.subr.mxu0 %v855_v0 }
  0x24   : > { %743 = vmatpush3.xpose.msk.msra.mxu0 %vm392_vm1, %v387_v15 }
  0x25   : > { %744 = vmatprep.subr.mxu0 %v855_v0 }
  0x28   : > { %745 = vmatpush3.xpose.msk.msra.mxu0 %vm392_vm1, %v386_v17 }
  0x29   : > { %746 = vmatprep.subr.mxu0 %v855_v0 }
  0x2c   : > { %747 = vmatpush3.xpose.msk.msra.mxu0 %vm392_vm1, %v385_v20 }
  0x2d   : > { %748 = vmatprep.subr.mxu0 %v855_v0 }
  0x30   : > { %749 = vmatpush3.xpose.msk.msra.mxu0 %vm392_vm1, %v384_v22 }
  0x31   : > { %750 = vmatprep.subr.mxu0 %v855_v0 }
  0x34   : > { %751 = vmatpush3.xpose.msk.msra.mxu0 %vm392_vm1, %v383_v25 }
  0x35   : > { %752 = vmatprep.subr.mxu0 %v855_v0 }
  0x38   : > { %753 = vmatpush3.xpose.msk.msra.mxu0 %vm392_vm1, %v382_v27 }
  0x39   : > { %754 = vmatprep.subr.mxu0 %v855_v0 }
  0x3c   : > { %755 = vmatpush3.xpose.msk.msra.mxu0 %vm392_vm1, %v381_v30 }
  0x3d   : > { %756 = vmatprep.subr.mxu0 %v855_v0 }
  0x40   : > { %757 = vmatpush3.xpose.msk.msra.mxu0 %vm392_vm1, %v380_v32 }
  0x41   : > { %758 = vmatprep.subr.mxu0 %v855_v0 }
  0x44   : > { %759 = vmatpush3.xpose.msk.msra.mxu0 %vm392_vm1, %v379_v35 }
  0x45   : > { %760 = vmatprep.subr.mxu0 %v855_v0 }
  0x48   : > { %761 = vmatpush3.xpose.msk.msra.mxu0 %vm392_vm1, %v378_v37 }
  0x49   : > { %762 = vmatprep.subr.mxu0 %v855_v0 }
  0x4c   : > { %763 = vmatpush3.xpose.msk.msra.mxu0 %vm392_vm1, %v377_v40 }
  0x4d   : > { %764 = vmatprep.subr.mxu0 %v855_v0 }
  0x50   : > { %765 = vmatpush3.xpose.msk.msra.mxu0 %vm392_vm1, %v376_v42 }
  0x51   : > { %766 = vmatprep.subr.mxu0 %v855_v0 }
  0x54   : > { %767 = vmatpush3.xpose.msk.msra.mxu0 %vm392_vm1, %v375_v44 }
  0x57   : > { %769 = vmatmul.mubr.msk.f32.vlgmr.msra.gmra.mxu0 %vm392_vm1, %v391_v45 }
  0x8c   : > { %v518_v46 = vpop.permute.xlu0 %517 }
  0x90   : > { %v525_v49 = vpop.permute.xlu0 %524 }
 0x117   : > { %v510_v47 = vpop.f32.mrf.mxu0 }
 0x118   : > { %v520_v48 = vmul.f32 %v518_v46, %v510_v47 }
 0x119   : > { %v770_v51 = vpop.f32.mrf.mxu0 }
 0x11a   : > { %v527_v52 = vadd.f32 %v525_v49, %v520_v48 }
 0x11c   : > { %v529_v53 = vadd.f32 %v528_v50, %v527_v52 }
 0x11e   : > { %530 = vst [vmem:[%s335_s12] sm:$0xff] %v529_v53 }
 0x11f PF: > { %s16_s25 = sadd.s32 1, %s853_s25   ;;  %s1038_s21 = smov %s845_s23 }
 0x120   : > { %p13_p8 = scmp.ge.s32.totalorder %s16_s25, 6   ;;  %s1039_s22 = smov %s849_s24 }
 0x121   : > { %s1040_s23 = smov %s1043_s26  ;;  %s1041_s24 = smov %s1047_s27 }
 0x122   :  { %15 = sbr.rel (!%p13_p8) target bundleno = 3 (0x3), region = 80 }

// kernel: mb_expand_conv_block.3
= control target key start
LH: loop header
LB: loop body
LE: loop exit
PB: predicated region body
PF: predicated region fallthrough
CT: control target
= control target key end

     0   :  { %s2703_s27 = smov 0   ;;  %s2705_s28 = smov 0   ;;  %s4259_s0 = inlined_call_operand.vmem [shape: f32[2,18,16,8], index: 0, kind: input, shape index: {}]   ;;  %s4260_s1 = inlined_call_operand.vmem [shape: f32[8,32], index: 1, kind: input, shape index: {}]   ;;  %s4261_s2 = inlined_call_operand.vmem [shape: f32[1,32], index: 2, kind: input, shape index: {}]   ;;  %s4262_s3 = inlined_call_operand.vmem [shape: f32[1,32], index: 3, kind: input, shape index: {}]   ;;  %s4263_s4 = inlined_call_operand.vmem [shape: f32[3,3,1,32], index: 4, kind: input, shape index: {}]   ;;  %s4264_s5 = inlined_call_operand.vmem [shape: f32[1,32], index: 5, kind: input, shape index: {}]   ;;  %s4265_s6 = inlined_call_operand.vmem [shape: f32[1,32], index: 6, kind: input, shape index: {}]   ;;  %s4266_s7 = inlined_call_operand.vmem [shape: bf16[2,16,16,32], index: 7, kind: output, shape index: {0}]   ;;  %s4267_s8 = inlined_call_operand.vmem [shape: f32[2,1,32], index: 8, kind: output, shape index: {1}]  }
   0x1   :  { %s2707_s29 = smov 0   ;;  %s2709_s30 = smov 0  }
   0x2   :  { %s2711_s9 = smov 0  }
   0x3 LB: > { %s28_s10 = sadd.s32 1, %s2646_s29  ;;  %s31_s11 = sadd.s32 1, %s2650_s30  ;;  %s2654_s9 = sphi %s2711_s9, %s19_s9   ;;  %s2650_s30 = sphi %s2709_s30, %s4384_s30   ;;  %s2646_s29 = sphi %s2707_s29, %s4383_s29   ;;  %s2642_s28 = sphi %s2705_s28, %s4382_s28   ;;  %s2638_s27 = sphi %s2703_s27, %s4381_s27  }
   0x4   : > { %p29_p0 = scmp.ge.s32.totalorder %s28_s10, 2  ;;  %p2243_p1 = scmp.ge.s32.totalorder %s2654_s9, 1 }
   0x5   : > { %p279_p2 = scmp.lt.s32.totalorder %s2654_s9, 5 }
   0x6   : > { %s4386_s10 = smov (%p29_p0, %s28_s10), 0  ;;  %s4388_s11 = smov (!%p29_p0, %s31_s11), %s2650_s30 }
   0x7   : > { %p280_p3 = pnand %p2243_p1, %p279_p2  ;;  %p33_p4 = scmp.ge.s32.totalorder %s4388_s11, 2 }
   0x9   : > { %s4390_s11 = smov (%p33_p4, %s4388_s11), 0  ;;  %283 = sbr.rel (%p280_p3) target bundleno = 529 (0x211), region = 48 }
   0xe   : > { %v363_v0 = vld [vmem:[%s4260_s1] sm:$0xff]  ;;  %p321_p5 = scmp.lt.s32.totalorder %s2642_s28, 1  ;;  %s2348_s14 = sshll.u32 %s2638_s27, 7  ;;  %vm364_vm0 = vcmask 64512   ;;  %vm865_vm1 = vcmask 261120   ;;  %vm868_vm2 = vcmask 254976  }
   0xf   : > { %2386 = vmatprep.subr.mxu0 %v363_v0  ;;  %2418 = vmatprep.subr.mxu1 %v363_v0  ;;  %v2656_v21 = vmov 0.0   ;;  %v2826_v22 = vld [vmem:[%s4261_s2] ss:$0 sm:$0xff]  ;;  %s2917_s12 = sshll.u32 %s2638_s27, 3  ;;  %p2345_p7 = scmp.ne.s32.totalorder %s2638_s27, 0 }
  0x10   : > { %2387 = vmatpush3.msra.mxu0 %v363_v0  ;;  %2419 = vmatpush3.msra.mxu1 %v363_v0  ;;  %s4392_s28 = smov (!%p321_p5, %s2642_s28), 1  ;;  %867 = vst.msk [vmem:[#allocation2 + $0x8] sm:$0xff] %vm865_vm1, %v2656_v21  ;;  %866 = vst.msk [vmem:[#allocation2] sm:$0xff] %vm865_vm1, %v2656_v21  ;;  %v2831_v24 = vld [vmem:[%s4262_s3] ss:$0 sm:$0xff]  ;;  %s2293_s13 = sadd.s32 4294967295, %s2917_s12 }
  0x11   : > { %s2420_s15 = smul.u32 288, %s4392_s28  ;;  %s2746_s18 = scalar_lea.vmem %s4267_s8, %s4392_s28  ;;  %869 = vst.msk [vmem:[#allocation2 + $0x10] sm:$0x3] %vm868_vm2, %v2656_v21  ;;  %872 = vst.msk [vmem:[#allocation2 + $0x28] sm:$0x3] %vm868_vm2, %v2656_v21 }
  0x12   : > { %870 = vst.msk [vmem:[#allocation2 + $0x18] sm:$0xff] %vm865_vm1, %v2656_v21  ;;  %871 = vst.msk [vmem:[#allocation2 + $0x20] sm:$0xff] %vm865_vm1, %v2656_v21  ;;  %p329_p6 = scmp.lt.s32.totalorder %s2917_s12, 15  ;;  %s2247_s25 = sshll.u32 %s4392_s28, 5 }
  0x13   : > { %s325_s21 = scalar_lea.vmem %s4259_s0, %s2420_s15  ;;  %873 = vst.msk [vmem:[#allocation2 + $0x30] sm:$0xff] %vm865_vm1, %v2656_v21  ;;  %874 = vst.msk [vmem:[#allocation2 + $0x38] sm:$0xff] %vm865_vm1, %v2656_v21 }
  0x14   : > { %s2751_s22 = scalar_lea.vmem %s325_s21, %s2348_s14  ;;  %875 = vst.msk [vmem:[#allocation2 + $0x40] sm:$0x3] %vm868_vm2, %v2656_v21  ;;  %878 = vst.msk [vmem:[#allocation2 + $0x58] sm:$0x3] %vm868_vm2, %v2656_v21  ;;  %s4394_s12 = smov (!%p329_p6, %s2917_s12), 15 }
  0x15   : > { %v343_v1 = vld [vmem:[%s2751_s22] sm:$0xff]  ;;  %v353_v2 = vld [vmem:[%s2751_s22 + $0x50] sm:$0xff]  ;;  %v344_v3 = vld [vmem:[%s2751_s22 + $0x8] sm:$0xff]  ;;  %876 = vst.msk [vmem:[#allocation2 + $0x48] sm:$0xff] %vm865_vm1, %v2656_v21  ;;  %s2246_s24 = sshll.u32 %s4394_s12, 1 }
  0x16   : > { %2388 = vmatprep.mubr.msk.f32.mxu0 %vm364_vm0, %v343_v1  ;;  %2403 = vmatprep.mubr.msk.f32.mxu1 %vm364_vm0, %v353_v2  ;;  %v354_v4 = vld [vmem:[%s2751_s22 + $0x58] sm:$0xff]  ;;  %v345_v5 = vld [vmem:[%s2751_s22 + $0x10] sm:$0xff]  ;;  %v355_v6 = vld [vmem:[%s2751_s22 + $0x60] sm:$0xff]  ;;  %877 = vst.msk [vmem:[#allocation2 + $0x50] sm:$0xff] %vm865_vm1, %v2656_v21  ;;  %s3747_s28 = sadd.s32 %s2247_s25, %s2246_s24 }
  0x17   : > { %2389 = vmatmul.mubr.msk.f32.vlgmr.msra.gmra.mxu0 %vm364_vm0, %v344_v3  ;;  %2404 = vmatmul.mubr.msk.f32.vlgmr.msra.gmra.mxu1 %vm364_vm0, %v354_v4  ;;  %v346_v7 = vld [vmem:[%s2751_s22 + $0x18] sm:$0xff]  ;;  %v356_v8 = vld [vmem:[%s2751_s22 + $0x68] sm:$0xff]  ;;  %v347_v9 = vld [vmem:[%s2751_s22 + $0x20] sm:$0xff]  ;;  %879 = vst.msk [vmem:[#allocation2 + $0x60] sm:$0xff] %vm865_vm1, %v2656_v21  ;;  %s2248_s12 = sshll.u32 %s3747_s28, 2 }
  0x18   : > { %2391 = vmatprep.mubr.msk.f32.mxu0 %vm364_vm0, %v345_v5  ;;  %2406 = vmatprep.mubr.msk.f32.mxu1 %vm364_vm0, %v355_v6  ;;  %v357_v10 = vld [vmem:[%s2751_s22 + $0x70] sm:$0xff]  ;;  %v348_v11 = vld [vmem:[%s2751_s22 + $0x28] sm:$0xff]  ;;  %v358_v12 = vld [vmem:[%s2751_s22 + $0x78] sm:$0xff]  ;;  %880 = vst.msk [vmem:[#allocation2 + $0x68] sm:$0xff] %vm865_vm1, %v2656_v21  ;;  %s3796_s14 = scalar_lea.vmem %s4266_s7, %s2248_s12 }
  0x19   : > { %v349_v13 = vld [vmem:[%s2751_s22 + $0x30] sm:$0xff]  ;;  %v359_v14 = vld [vmem:[%s2751_s22 + $0x80] sm:$0xff]  ;;  %v350_v15 = vld [vmem:[%s2751_s22 + $0x38] sm:$0xff]  ;;  %881 = vst.msk [vmem:[#allocation2 + $0x70] sm:$0x3] %vm868_vm2, %v2656_v21 }
  0x1a   : > { %v360_v16 = vld [vmem:[%s2751_s22 + $0x88] sm:$0xff]  ;;  %v351_v17 = vld [vmem:[%s2751_s22 + $0x40] sm:$0xff]  ;;  %v361_v18 = vld [vmem:[%s2751_s22 + $0x90] sm:$0xff]  ;;  %882 = vst.msk [vmem:[#allocation2 + $0x78] sm:$0xff] %vm865_vm1, %v2656_v21 }
  0x1b   : > { %2392 = vmatmul.mubr.msk.f32.gmra.mxu0 %vm364_vm0, %v346_v7  ;;  %2407 = vmatmul.mubr.msk.f32.gmra.mxu1 %vm364_vm0, %v356_v8  ;;  %v352_v19 = vld [vmem:[%s2751_s22 + $0x48] sm:$0xff]  ;;  %v362_v20 = vld [vmem:[%s2751_s22 + $0x98] sm:$0xff]  ;;  %883 = vst.msk [vmem:[#allocation2 + $0x80] sm:$0xff] %vm865_vm1, %v2656_v21  ;;  %885 = vst.msk [vmem:[#allocation2 + $0x90] sm:$0xff] %vm865_vm1, %v2656_v21 }
  0x1c   : > { %2394 = vmatprep.mubr.msk.f32.mxu0 %vm364_vm0, %v347_v9  ;;  %2409 = vmatprep.mubr.msk.f32.mxu1 %vm364_vm0, %v357_v10  ;;  %884 = vst.msk [vmem:[#allocation2 + $0x88] sm:$0x3] %vm868_vm2, %v2656_v21  ;;  %887 = vst.msk [vmem:[#allocation2 + $0xa0] sm:$0x3] %vm868_vm2, %v2656_v21 }
  0x1d   : > { %886 = vst.msk [vmem:[#allocation2 + $0x98] sm:$0xff] %vm865_vm1, %v2656_v21  ;;  %888 = vst.msk [vmem:[#allocation2 + $0xa8] sm:$0xff] %vm865_vm1, %v2656_v21 }
  0x1e   : > { %889 = vst.msk [vmem:[#allocation2 + $0xb0] sm:$0xff] %vm865_vm1, %v2656_v21  ;;  %891 = vst.msk [vmem:[#allocation2 + $0xc0] sm:$0xff] %vm865_vm1, %v2656_v21 }
  0x1f   : > { %2395 = vmatmul.mubr.msk.f32.gmra.mxu0 %vm364_vm0, %v348_v11  ;;  %2410 = vmatmul.mubr.msk.f32.gmra.mxu1 %vm364_vm0, %v358_v12  ;;  %890 = vst.msk [vmem:[#allocation2 + $0xb8] sm:$0x3] %vm868_vm2, %v2656_v21  ;;  %893 = vst.msk [vmem:[#allocation2 + $0xd0] sm:$0x3] %vm868_vm2, %v2656_v21 }
  0x20   : > { %2397 = vmatprep.mubr.msk.f32.mxu0 %vm364_vm0, %v349_v13  ;;  %2412 = vmatprep.mubr.msk.f32.mxu1 %vm364_vm0, %v359_v14  ;;  %892 = vst.msk [vmem:[#allocation2 + $0xc8] sm:$0xff] %vm865_vm1, %v2656_v21  ;;  %894 = vst.msk [vmem:[#allocation2 + $0xd8] sm:$0xff] %vm865_vm1, %v2656_v21 }
  0x21   : > { %895 = vst.msk [vmem:[#allocation2 + $0xe0] sm:$0xff] %vm865_vm1, %v2656_v21 }
  0x22   : > { %896 = vst.msk [vmem:[#allocation2 + $0xe8] sm:$0x3] %vm868_vm2, %v2656_v21 }
  0x23   : > { %2398 = vmatmul.mubr.msk.f32.gmra.mxu0 %vm364_vm0, %v350_v15  ;;  %2413 = vmatmul.mubr.msk.f32.gmra.mxu1 %vm364_vm0, %v360_v16 }
  0x24   : > { %2400 = vmatprep.mubr.msk.f32.mxu0 %vm364_vm0, %v351_v17  ;;  %2415 = vmatprep.mubr.msk.f32.mxu1 %vm364_vm0, %v361_v18 }
  0x27   : > { %2401 = vmatmul.mubr.msk.f32.gmra.mxu0 %vm364_vm0, %v352_v19  ;;  %2416 = vmatmul.mubr.msk.f32.gmra.mxu1 %vm364_vm0, %v362_v20 }
  0xd7   : > { %v2390_v23 = vpop.f32.mrf.mxu0  ;;  %v2405_v25 = vpop.f32.mrf.mxu1 }
  0xd8   : > { %v598_v26 = vmul.f32 %v2390_v23, %v2826_v22  ;;  %v608_v27 = vmul.f32 %v2405_v25, %v2826_v22 }
  0xd9   : > { %v491_v28 = vpop.f32.mrf.mxu0  ;;  %v541_v29 = vpop.f32.mrf.mxu1 }
  0xda   : > { %v2836_v30 = vadd.f32 %v2831_v24, %v598_v26  ;;  %v2839_v31 = vadd.f32 %v2831_v24, %v608_v27  ;;  %v597_v32 = vmul.f32 %v2826_v22, %v491_v28  ;;  %v607_v33 = vmul.f32 %v2826_v22, %v541_v29 }
  0xdb   : > { %v2393_v34 = vpop.f32.mrf.mxu0  ;;  %v2408_v35 = vpop.f32.mrf.mxu1 }
  0xdc   : > { %v2274_v36 = vmul.f32 -1.442695, %v2836_v30  ;;  %v2284_v37 = vmul.f32 -1.442695, %v2839_v31  ;;  %v2846_v38 = vadd.f32 %v2831_v24, %v597_v32  ;;  %v2849_v39 = vadd.f32 %v2831_v24, %v607_v33 }
  0xdd   : > { %v600_v40 = vmul.f32 %v2393_v34, %v2826_v22  ;;  %v610_v41 = vmul.f32 %v2408_v35, %v2826_v22  ;;  %v501_v42 = vpop.f32.mrf.mxu0  ;;  %v551_v43 = vpop.f32.mrf.mxu1 }
  0xde   : > { %2463 = vpow2.f32 %v2274_v36  ;;  %v2273_v44 = vmul.f32 -1.442695, %v2846_v38  ;;  %v2283_v45 = vmul.f32 -1.442695, %v2849_v39  ;;  %v599_v46 = vmul.f32 %v2826_v22, %v501_v42 }
  0xdf   : > { %2465 = vpow2.f32 %v2284_v37  ;;  %v2857_v47 = vadd.f32 %v2831_v24, %v600_v40  ;;  %v2860_v48 = vadd.f32 %v2831_v24, %v610_v41  ;;  %v609_v49 = vmul.f32 %v2826_v22, %v551_v43  ;;  %v2396_v50 = vpop.f32.mrf.mxu0  ;;  %v2411_v51 = vpop.f32.mrf.mxu1 }
  0xe0   : > { %2467 = vpow2.f32 %v2273_v44  ;;  %v2864_v52 = vadd.f32 %v2831_v24, %v599_v46  ;;  %v602_v53 = vmul.f32 %v2396_v50, %v2826_v22  ;;  %v612_v54 = vmul.f32 %v2411_v51, %v2826_v22 }
  0xe1   : > { %2469 = vpow2.f32 %v2283_v45  ;;  %v2276_v55 = vmul.f32 -1.442695, %v2857_v47  ;;  %v2286_v56 = vmul.f32 -1.442695, %v2860_v48  ;;  %v2871_v57 = vadd.f32 %v2831_v24, %v609_v49  ;;  %v511_v58 = vpop.f32.mrf.mxu0  ;;  %v561_v59 = vpop.f32.mrf.mxu1 }
  0xe2   : > { %v2275_v60 = vmul.f32 -1.442695, %v2864_v52  ;;  %v2875_v61 = vadd.f32 %v2831_v24, %v602_v53  ;;  %v2878_v62 = vadd.f32 %v2831_v24, %v612_v54  ;;  %v601_v63 = vmul.f32 %v2826_v22, %v511_v58 }
  0xe3   : > { %2471 = vpow2.f32 %v2276_v55  ;;  %v2285_v0 = vmul.f32 -1.442695, %v2871_v57  ;;  %v611_v1 = vmul.f32 %v2826_v22, %v561_v59  ;;  %v2399_v2 = vpop.f32.mrf.mxu0  ;;  %v2414_v3 = vpop.f32.mrf.mxu1  ;;  %v2925_v51 = vstv %s2293_s13 }
  0xe4   : > { %2473 = vpow2.f32 %v2286_v56  ;;  %v2278_v4 = vmul.f32 -1.442695, %v2875_v61  ;;  %v2288_v5 = vmul.f32 -1.442695, %v2878_v62  ;;  %v2886_v6 = vadd.f32 %v2831_v24, %v601_v63  ;;  %4281 = vst [vmem:[#allocation6_spill] sm:$0xff] %v2925_v51 }
  0xe5   : > { %2475 = vpow2.f32 %v2275_v60  ;;  %v2889_v7 = vadd.f32 %v2831_v24, %v611_v1  ;;  %v604_v8 = vmul.f32 %v2399_v2, %v2826_v22  ;;  %v614_v9 = vmul.f32 %v2414_v3, %v2826_v22  ;;  %v521_v10 = vpop.f32.mrf.mxu0  ;;  %v571_v11 = vpop.f32.mrf.mxu1 }
  0xe6   : > { %2477 = vpow2.f32 %v2285_v0  ;;  %v2277_v12 = vmul.f32 -1.442695, %v2886_v6  ;;  %v603_v13 = vmul.f32 %v2826_v22, %v521_v10  ;;  %v613_v45 = vmul.f32 %v2826_v22, %v571_v11 }
  0xe7   : > { %2479 = vpow2.f32 %v2278_v4  ;;  %v2287_v14 = vmul.f32 -1.442695, %v2889_v7  ;;  %v2897_v15 = vadd.f32 %v2831_v24, %v604_v8  ;;  %v2900_v16 = vadd.f32 %v2831_v24, %v614_v9  ;;  %v2402_v17 = vpop.f32.mrf.mxu0  ;;  %v2417_v18 = vpop.f32.mrf.mxu1 }
  0xe8   : > { %v606_v19 = vmul.f32 %v2402_v17, %v2826_v22  ;;  %2481 = vpow2.f32 %v2288_v5  ;;  %v616_v23 = vmul.f32 %v2417_v18, %v2826_v22  ;;  %v2907_v26 = vadd.f32 %v2831_v24, %v603_v13 }
  0xe9   : > { %v2280_v20 = vmul.f32 -1.442695, %v2897_v15  ;;  %v2290_v21 = vmul.f32 -1.442695, %v2900_v16  ;;  %v531_v25 = vpop.f32.mrf.mxu0  ;;  %2483 = vpow2.f32 %v2277_v12  ;;  %v2928_v59 = vadd.f32 %v2831_v24, %v613_v45  ;;  %v581_v4 = vpop.f32.mrf.mxu1 }
  0xea   : > { %v2910_v27 = vadd.f32 %v2831_v24, %v606_v19  ;;  %2485 = vpow2.f32 %v2287_v14  ;;  %v2913_v29 = vadd.f32 %v2831_v24, %v616_v23  ;;  %v605_v32 = vmul.f32 %v2826_v22, %v531_v25 }
  0xeb   : > { %v2464_v28 = vpop.eup %2463  ;;  %2487 = vpow2.f32 %v2280_v20  ;;  %v2279_v42 = vmul.f32 -1.442695, %v2907_v26  ;;  %v790_v60 = vadd.s32 5, %v2925_v51  ;;  %vm795_vm3 = vcmp.ge.s32.totalorder %v2925_v51, 0 }
  0xec   : > { %4278 = vst [vmem:[#allocation3_spill] sm:$0xff] %v2910_v27  ;;  %4279 = vst [vmem:[#allocation4_spill] sm:$0xff] %v2913_v29  ;;  %v2466_v33 = vpop.eup %2465  ;;  %v705_v34 = vadd.f32 1.0, %v2464_v28  ;;  %2489 = vpow2.f32 %v2290_v21  ;;  %v2920_v37 = vadd.f32 %v2831_v24, %v605_v32  ;;  %vm805_vm4 = vcmp.lt.s32.totalorder %v2925_v51, 16 }
  0xed   : > { %v2468_v35 = vpop.eup %2467  ;;  %v715_v36 = vadd.f32 1.0, %v2466_v33  ;;  %v2289_v3 = vmul.f32 -1.442695, %v2928_v59  ;;  %vm800_vm5 = vcmp.ge.s32.totalorder %v790_v60, 0  ;;  %vm810_vm6 = vcmp.lt.s32.totalorder %v790_v60, 16  ;;  %vm2937_vm7 = vmand %vm795_vm3, %vm805_vm4 }
  0xee   : > { %4280 = vst [vmem:[#allocation5_spill] sm:$0xff] %v2920_v37  ;;  %v2470_v40 = vpop.eup %2469  ;;  %2491 = vrcp.f32 %v705_v34  ;;  %v704_v41 = vadd.f32 1.0, %v2468_v35  ;;  %v786_v8 = vadd.s32 1, %v2925_v51  ;;  %v615_v9 = vmul.f32 %v2826_v22, %v581_v4  ;;  %vm2945_vm8 = vmand %vm800_vm5, %vm810_vm6  ;;  %v3014_v4 = vld [vmem:[%s4263_s4 + $0x4] ss:$0 sm:$0xff] }
  0xef   : > { %2493 = vrcp.f32 %v715_v36  ;;  %v714_v43 = vadd.f32 1.0, %v2470_v40  ;;  %v791_v11 = vadd.s32 6, %v2925_v51  ;;  %v787_v23 = vadd.s32 2, %v2925_v51 }
  0xf0   : > { %v2472_v44 = vpop.eup %2471  ;;  %2495 = vrcp.f32 %v704_v41  ;;  %v2942_v14 = vadd.f32 %v2831_v24, %v615_v9  ;;  %vm796_vm9 = vcmp.ge.s32.totalorder %v786_v8, 0  ;;  %vm806_vm10 = vcmp.lt.s32.totalorder %v786_v8, 16  ;;  %v3020_v9 = vld [vmem:[%s4263_s4 + $0x5] ss:$0 sm:$0xff] }
  0xf1   : > { %v2474_v46 = vpop.eup %2473  ;;  %2497 = vrcp.f32 %v714_v43  ;;  %v707_v49 = vadd.f32 1.0, %v2472_v44  ;;  %vm801_vm11 = vcmp.ge.s32.totalorder %v791_v11, 0  ;;  %vm811_vm12 = vcmp.lt.s32.totalorder %v791_v11, 16  ;;  %vm2962_vm13 = vmand %vm796_vm9, %vm806_vm10  ;;  %v3030_v11 = vld [vmem:[%s4263_s4 + $0x8] ss:$0 sm:$0xff] }
  0xf2   : > { %v2476_v50 = vpop.eup %2475  ;;  %v717_v53 = vadd.f32 1.0, %v2474_v46  ;;  %2499 = vpow2.f32 %v2279_v42  ;;  %4284 = vst [vmem:[#allocation7_spill] sm:$0xff] %v2942_v14  ;;  %vm2971_vm14 = vmand %vm801_vm11, %vm811_vm12  ;;  %vm797_vm15 = vcmp.ge.s32.totalorder %v787_v23, 0  ;;  %vm807_vm0 = vcmp.lt.s32.totalorder %v787_v23, 16 }
  0xf3   : > { %v2478_v54 = vpop.eup %2477  ;;  %2501 = vrcp.f32 %v707_v49  ;;  %v706_v55 = vadd.f32 1.0, %v2476_v50  ;;  %vm2984_vm2 = vmand %vm797_vm15, %vm807_vm0  ;;  %v2291_v13 = vmul.f32 -1.442695, %v2942_v14  ;;  %vm1042_vm3 = vcmask 1046528  }
  0xf4   : > { %v2480_v56 = vpop.eup %2479  ;;  %2503 = vrcp.f32 %v717_v53  ;;  %v716_v58 = vadd.f32 1.0, %v2478_v54  ;;  %vm1171_vm4 = vcmask 1045504   ;;  %vm2058_vm0 = vcmask 257024  }
  0xf5   : > { %2505 = vrcp.f32 %v706_v55  ;;  %v709_v63 = vadd.f32 1.0, %v2480_v56  ;;  %v2482_v0 = vpop.eup %2481 }
  0xf6   : > { %2507 = vrcp.f32 %v716_v58  ;;  %v2484_v1 = vpop.eup %2483  ;;  %v719_v20 = vadd.f32 1.0, %v2482_v0  ;;  %v3007_v0 = vld [vmem:[%s4263_s4 + $0x2] ss:$0 sm:$0xff] }
  0xf7   : > { %2509 = vrcp.f32 %v709_v63  ;;  %v2486_v2 = vpop.eup %2485  ;;  %v708_v43 = vadd.f32 1.0, %v2484_v1  ;;  %v2282_v63 = vmul.f32 -1.442695, %v2910_v27  ;;  %v2292_v1 = vmul.f32 -1.442695, %v2913_v29 }
  0xf8   : > { %v2488_v5 = vpop.eup %2487  ;;  %2511 = vpow2.f32 %v2289_v3 }
  0xf9   : > { %v2490_v10 = vpop.eup %2489  ;;  %2513 = vrcp.f32 %v719_v20  ;;  %v3044_v20 = vadd.s32 3, %v2925_v51 }
  0xfa   : > { %v721_v56 = vadd.f32 1.0, %v2490_v10  ;;  %2515 = vrcp.f32 %v708_v43  ;;  %v3025_v10 = vld [vmem:[%s4263_s4 + $0x7] ss:$0 sm:$0xff] }
  0xfb   : > { %v2492_v12 = vpop.eup %2491 }
  0xfc   : > { %v2494_v17 = vpop.eup %2493  ;;  %v765_v18 = vmul.f32 %v2492_v12, %v2836_v30  ;;  %v3033_v12 = vadd.s32 7, %v2925_v51 }
  0xfd   : > { %v2496_v22 = vpop.eup %2495  ;;  %v775_v21 = vmul.f32 %v2494_v17, %v2839_v31 }
  0xfe   : > { %v2498_v25 = vpop.eup %2497  ;;  %v846_v24 = vsel %vm2937_vm7, %v765_v18, 0.0  ;;  %v764_v28 = vmul.f32 %v2496_v22, %v2846_v38  ;;  %vm802_vm5 = vcmp.ge.s32.totalorder %v3033_v12, 0  ;;  %vm812_vm6 = vcmp.lt.s32.totalorder %v3033_v12, 16 }
  0xff   : > { %v2500_v30 = vpop.eup %2499  ;;  %898 = vst.msk [vmem:[#allocation2 + $0x9] sm:$0xff] %vm865_vm1, %v846_v24  ;;  %v856_v32 = vsel %vm2945_vm8, %v775_v21, 0.0  ;;  %v774_v31 = vmul.f32 %v2498_v25, %v2849_v39  ;;  %v3053_v24 = vadd.s32 8, %v2925_v51  ;;  %vm3320_vm11 = vmand %vm802_vm5, %vm812_vm6 }
 0x100   : > { %v2502_v33 = vpop.eup %2501  ;;  %908 = vst.msk [vmem:[#allocation2 + $0x81] sm:$0xff] %vm865_vm1, %v856_v32  ;;  %v845_v34 = vsel %vm2937_vm7, %v764_v28, 0.0  ;;  %vm798_vm7 = vcmp.ge.s32.totalorder %v3044_v20, 0 }
 0x101   : > { %v2504_v38 = vpop.eup %2503  ;;  %897 = vst.msk [vmem:[#allocation2 + $0x1] sm:$0xff] %vm865_vm1, %v845_v34  ;;  %v855_v36 = vsel %vm2945_vm8, %v774_v31, 0.0  ;;  %v767_v39 = vmul.f32 %v2502_v33, %v2857_v47  ;;  %v718_v47 = vadd.f32 1.0, %v2486_v2  ;;  %vm808_vm8 = vcmp.lt.s32.totalorder %v3044_v20, 16 }
 0x102   : > { %v2506_v41 = vpop.eup %2505  ;;  %907 = vst.msk [vmem:[#allocation2 + $0x79] sm:$0xff] %vm865_vm1, %v855_v36  ;;  %v777_v42 = vmul.f32 %v2504_v38, %v2860_v48  ;;  %v711_v48 = vadd.f32 1.0, %v2488_v5  ;;  %v2281_v5 = vmul.f32 -1.442695, %v2920_v37  ;;  %v3070_v36 = vadd.s32 4, %v2925_v51  ;;  %vm3362_vm12 = vmand %vm798_vm7, %vm808_vm8 }
 0x103   : > { %v2508_v44 = vpop.eup %2507  ;;  %v848_v45 = vsel %vm2962_vm13, %v767_v39, 0.0  ;;  %v766_v46 = vmul.f32 %v2506_v41, %v2864_v52  ;;  %2517 = vrcp.f32 %v718_v47  ;;  %vm803_vm9 = vcmp.ge.s32.totalorder %v3053_v24, 0 }
 0x104   : > { %v2510_v49 = vpop.eup %2509  ;;  %900 = vst.msk [vmem:[#allocation2 + $0x21] sm:$0xff] %vm865_vm1, %v848_v45  ;;  %v858_v50 = vsel %vm2971_vm14, %v777_v42, 0.0  ;;  %v776_v53 = vmul.f32 %v2508_v44, %v2871_v57  ;;  %v710_v57 = vadd.f32 1.0, %v2500_v30  ;;  %2519 = vrcp.f32 %v711_v48  ;;  %4293 = vst [vmem:[#allocation8_spill] sm:$0xff] %v3070_v36 }
 0x105   : > { %910 = vst.msk [vmem:[#allocation2 + $0x99] sm:$0xff] %vm865_vm1, %v858_v50  ;;  %v847_v55 = vsel %vm2962_vm13, %v766_v46, 0.0  ;;  %v769_v52 = vmul.f32 %v2510_v49, %v2875_v61  ;;  %v3002_v61 = vld [vmem:[%s4263_s4 + $0x1] ss:$0 sm:$0xff]  ;;  %v2512_v2 = vpop.eup %2511  ;;  %2521 = vrcp.f32 %v721_v56  ;;  %vm813_vm10 = vcmp.lt.s32.totalorder %v3053_v24, 16 }
 0x106   : > { %899 = vst.msk [vmem:[#allocation2 + $0x19] sm:$0xff] %vm865_vm1, %v847_v55  ;;  %v857_v58 = vsel %vm2971_vm14, %v776_v53, 0.0  ;;  %v919_v3 = vld [vmem:[#allocation2 + $0x10] sm:$0x3]  ;;  %2523 = vrcp.f32 %v710_v57  ;;  %v720_v22 = vadd.f32 1.0, %v2512_v2  ;;  %v2514_v21 = vpop.eup %2513  ;;  %vm3378_vm13 = vmand %vm803_vm9, %vm813_vm10 }
 0x107   : > { %909 = vst.msk [vmem:[#allocation2 + $0x91] sm:$0xff] %vm865_vm1, %v857_v58  ;;  %v850_v60 = vsel %vm2984_vm2, %v769_v52, 0.0  ;;  %v934_v8 = vld [vmem:[#allocation2 + $0x88] sm:$0x3]  ;;  %2525 = vpow2.f32 %v2282_v63  ;;  %v3037_v17 = vmul.f32 %v3002_v61, %v919_v3  ;;  %v3047_v23 = vmul.f32 %v3007_v0, %v919_v3  ;;  %v2516_v53 = vpop.eup %2515 }
 0x108   : > { %902 = vst.msk [vmem:[#allocation2 + $0x39] sm:$0xff] %vm865_vm1, %v850_v60  ;;  %v3039_v18 = vld [vmem:[#allocation2] sm:$0xff]  ;;  %v3041_v19 = vld [vmem:[#allocation2 + $0x8] sm:$0xff]  ;;  %2527 = vpow2.f32 %v2292_v1  ;;  %v3050_v25 = vmul.f32 %v3002_v61, %v934_v8  ;;  %v1306_v28 = vmul.f32 %v3014_v4, %v934_v8  ;;  %v1434_v30 = vmul.f32 %v3020_v9, %v934_v8 }
 0x109   : > { %2529 = vpow2.f32 %v2281_v5  ;;  %v1599_v32 = vmul.f32 %v3025_v10, %v934_v8  ;;  %v3059_v31 = vmul.f32 %v3030_v11, %v934_v8  ;;  %v3061_v33 = vld [vmem:[#allocation2 + $0x78] sm:$0xff]  ;;  %v3063_v34 = vld [vmem:[#allocation2 + $0x80] sm:$0xff]  ;;  %v994_v35 = vmul.f32 %v3002_v61, %v3039_v18 }
 0x10a   : > { %v995_v38 = vmul.f32 %v3002_v61, %v3041_v19  ;;  %2531 = vpow2.f32 %v2291_v13  ;;  %v1046_v39 = vrot.slane %v3037_v17, 1  ;;  %v3074_v40 = vmul.f32 %v3007_v0, %v934_v8 }
 0x10b   : > { %v3077_v41 = vmul.f32 %v2514_v21, %v2878_v62  ;;  %2533 = vrcp.f32 %v720_v22  ;;  %v1071_v43 = vrot.slane %v3050_v25, 1  ;;  %v1009_v44 = vmul.f32 %v3002_v61, %v3061_v33 }
 0x10c   : > { %v1010_v45 = vmul.f32 %v3002_v61, %v3063_v34  ;;  %v1363_v46 = vrot.slane %v1306_v28, 1  ;;  %v1491_v47 = vrot.slane %v1434_v30, 2  ;;  %v1654_v49 = vrot.slane %v1599_v32, 1 }
 0x10d   : > { %v1782_v50 = vrot.slane %v3059_v31, 2  ;;  %v1043_v48 = vrot.slane %v994_v35, 1  ;;  %v1044_v62 = vrot.slane %v995_v38, 1  ;;  %v1123_v55 = vmul.f32 %v3007_v0, %v3039_v18 }
 0x10e   : > { %v1124_v52 = vmul.f32 %v3007_v0, %v3041_v19  ;;  %v1304_v58 = vmul.f32 %v3014_v4, %v3061_v33  ;;  %v1305_v57 = vmul.f32 %v3014_v4, %v3063_v34  ;;  %v1432_v60 = vmul.f32 %v3020_v9, %v3061_v33 }
 0x10f   : > { %v1433_v63 = vmul.f32 %v3020_v9, %v3063_v34  ;;  %v1068_v2 = vrot.slane %v1009_v44, 1  ;;  %v1069_v3 = vrot.slane %v1010_v45, 1  ;;  %v1597_v5 = vmul.f32 %v3025_v10, %v3061_v33  ;;  %v3119_v44 = vld [vmem:[%s4263_s4] ss:$0 sm:$0xff] }
 0x110   : > { %v3090_v56 = vpop.eup %2517  ;;  %v1598_v8 = vmul.f32 %v3025_v10, %v3063_v34  ;;  %v1360_v17 = vrot.slane %v1304_v58, 1  ;;  %v1361_v22 = vrot.slane %v1305_v57, 1  ;;  %v1488_v21 = vrot.slane %v1432_v60, 2  ;;  %v925_v24 = vld [vmem:[#allocation2 + $0x40] sm:$0x3] }
 0x111   : > { %v3100_v1 = vpop.eup %2519  ;;  %v1489_v25 = vrot.slane %v1433_v63, 2  ;;  %v1651_v30 = vrot.slane %v1597_v5, 1  ;;  %v1725_v31 = vmul.f32 %v3030_v11, %v3061_v33  ;;  %v1726_v35 = vmul.f32 %v3030_v11, %v3063_v34 }
 0x112   : > { %v3106_v13 = vpop.eup %2521  ;;  %v1652_v32 = vrot.slane %v1598_v8, 1  ;;  %v3122_v45 = vsel %vm1042_vm3, %v1360_v17, %v1361_v22  ;;  %v3125_v58 = vsel %vm1042_vm3, %v1361_v22, %v1363_v46  ;;  %v1045_v46 = vsel %vm1042_vm3, %v1043_v48, %v1044_v62 }
 0x113   : > { %v3108_v28 = vpop.eup %2523  ;;  %4295 = vst [vmem:[#allocation10_spill] sm:$0xff] %v3122_v45  ;;  %4296 = vst [vmem:[#allocation11_spill] sm:$0xff] %v3125_v58  ;;  %v3128_v57 = vsel %vm1171_vm4, %v1488_v21, %v1489_v25  ;;  %v3131_v60 = vsel %vm1171_vm4, %v1489_v25, %v1491_v47  ;;  %v1779_v42 = vrot.slane %v1725_v31, 2  ;;  %v1780_v17 = vrot.slane %v1726_v35, 2 }
 0x114   : > { %v3114_v38 = vpop.eup %2525  ;;  %4297 = vst [vmem:[#allocation12_spill] sm:$0xff] %v3128_v57  ;;  %4298 = vst [vmem:[#allocation13_spill] sm:$0xff] %v3131_v60  ;;  %v3136_v5 = vsel %vm1042_vm3, %v1651_v30, %v1652_v32  ;;  %v3139_v8 = vsel %vm1042_vm3, %v1652_v32, %v1654_v49  ;;  %v1047_v22 = vsel %vm1042_vm3, %v1044_v62, %v1046_v39  ;;  %v1172_v21 = vrot.slane %v1123_v55, 2 }
 0x115   : > { %4294 = vst [vmem:[#allocation9_spill] sm:$0xff] %v3114_v38  ;;  %v3133_v63 = vpop.eup %2527  ;;  %4300 = vst [vmem:[#allocation15_spill] sm:$0xff] %v3136_v5  ;;  %v1173_v57 = vrot.slane %v1124_v52, 2  ;;  %v954_v47 = vmul.f32 %v3119_v44, %v3039_v18  ;;  %v955_v25 = vmul.f32 %v3119_v44, %v3041_v19  ;;  %v3150_v30 = vsel %vm1171_vm4, %v1779_v42, %v1780_v17  ;;  %v920_v19 = vld [vmem:[#allocation2 + $0x18] sm:$0xff]  ;;  %v921_v42 = vld [vmem:[#allocation2 + $0x20] sm:$0xff] }
 0x116   : > { %4299 = vst [vmem:[#allocation14_spill] sm:$0xff] %v3133_v63  ;;  %4301 = vst [vmem:[#allocation16_spill] sm:$0xff] %v3139_v8  ;;  %v3141_v45 = vpop.eup %2529  ;;  %v3153_v49 = vsel %vm1171_vm4, %v1780_v17, %v1782_v50  ;;  %v1070_v48 = vsel %vm1042_vm3, %v1068_v2, %v1069_v3  ;;  %v1072_v39 = vsel %vm1042_vm3, %v1069_v3, %v1071_v43  ;;  %v922_v2 = vld [vmem:[#allocation2 + $0x28] sm:$0x3]  ;;  %v4306_v17 = vrot.slane %v3047_v23, 2 }
 0x117   : > { %4302 = vst [vmem:[#allocation17_spill] sm:$0xff] %v3141_v45  ;;  %4303 = vst [vmem:[#allocation18_spill] sm:$0xff] %v3150_v30  ;;  %v3155_v32 = vpop.eup %2531  ;;  %v3161_v62 = vmul.f32 %v3007_v0, %v3061_v33  ;;  %v3165_v18 = vmul.f32 %v3007_v0, %v3063_v34  ;;  %v1099_v50 = vadd.f32 %v1045_v46, %v954_v47  ;;  %v3188_v47 = vld [vmem:[%s4263_s4 + $0x3] ss:$0 sm:$0xff] }
 0x118   : > { %4304 = vst [vmem:[#allocation19_spill] sm:$0xff] %v3153_v49  ;;  %4305 = vst [vmem:[#allocation20_spill] sm:$0xff] %v3155_v32  ;;  %v3167_v55 = vpop.eup %2533  ;;  %v1100_v52 = vadd.f32 %v1047_v22, %v955_v25  ;;  %v964_v31 = vmul.f32 %v3119_v44, %v3061_v33  ;;  %v965_v43 = vmul.f32 %v3119_v44, %v3063_v34 }
 0x119   : > { %v1174_v35 = vsel %vm1171_vm4, %v1172_v21, %v1173_v57  ;;  %v1176_v49 = vsel %vm1171_vm4, %v1173_v57, %v4306_v17  ;;  %v3179_v30 = vmul.f32 %v2516_v53, %v2886_v6  ;;  %v3193_v21 = vld [vmem:[%s4263_s4 + $0x6] ss:$0 sm:$0xff]  ;;  %v997_v23 = vmul.f32 %v3002_v61, %v920_v19 }
 0x11a   : > { %v3181_v46 = vadd.f32 %v1070_v48, %v964_v31  ;;  %v3183_v22 = vadd.f32 %v1072_v39, %v965_v43  ;;  %4307 = vst [vmem:[#allocation21_spill] sm:$0xff] %v3193_v21  ;;  %v998_v57 = vmul.f32 %v3002_v61, %v921_v42  ;;  %v999_v25 = vmul.f32 %v3002_v61, %v922_v2  ;;  %v937_v39 = vld [vmem:[#allocation2 + $0xa0] sm:$0x3] }
 0x11b   : > { %v1128_v48 = vmul.f32 %v3007_v0, %v922_v2  ;;  %v1228_v31 = vadd.f32 %v1174_v35, %v1099_v50  ;;  %v1229_v43 = vadd.f32 %v1176_v49, %v1100_v52  ;;  %v1294_v17 = vmul.f32 %v3014_v4, %v922_v2 }
 0x11c   : > { %v3203_v3 = vmul.f32 %v3020_v9, %v922_v2  ;;  %v3207_v8 = vmul.f32 %v3188_v47, %v3061_v33  ;;  %v3211_v6 = vmul.f32 %v3188_v47, %v3063_v34  ;;  %v3215_v53 = vmul.f32 %v3193_v21, %v3061_v33 }
 0x11d   : > { %v3219_v49 = vmul.f32 %v3193_v21, %v3063_v34  ;;  %v3222_v50 = vmul.f32 %v3002_v61, %v937_v39  ;;  %v3225_v52 = vmul.f32 %v3007_v0, %v937_v39  ;;  %v1048_v2 = vrot.slane %v997_v23, 1 }
 0x11e   : > { %4308 = vst [vmem:[#allocation22_spill] sm:$0xff] %v3207_v8  ;;  %4309 = vst [vmem:[#allocation23_spill] sm:$0xff] %v3211_v6  ;;  %v1049_v35 = vrot.slane %v998_v57, 1  ;;  %v1051_v5 = vrot.slane %v999_v25, 1  ;;  %v1180_v60 = vrot.slane %v1128_v48, 2  ;;  %v1126_v58 = vmul.f32 %v3007_v0, %v920_v19 }
 0x11f   : > { %4310 = vst [vmem:[#allocation24_spill] sm:$0xff] %v3215_v53  ;;  %4311 = vst [vmem:[#allocation25_spill] sm:$0xff] %v3219_v49  ;;  %v1127_v6 = vmul.f32 %v3007_v0, %v921_v42  ;;  %v1343_v33 = vrot.slane %v1294_v17, 1  ;;  %v1471_v53 = vrot.slane %v3203_v3, 2  ;;  %v1292_v34 = vmul.f32 %v3014_v4, %v920_v19 }
 0x120   : > { %v1293_v49 = vmul.f32 %v3014_v4, %v921_v42  ;;  %v3233_v8 = vmul.f32 %v3014_v4, %v937_v39  ;;  %v3236_v14 = vmul.f32 %v3020_v9, %v937_v39  ;;  %v3239_v23 = vmul.f32 %v3025_v10, %v937_v39 }
 0x121   : > { %v3242_v57 = vmul.f32 %v3030_v11, %v937_v39  ;;  %v956_v25 = vmul.f32 %v3119_v44, %v920_v19  ;;  %v957_v3 = vmul.f32 %v3119_v44, %v921_v42  ;;  %v1050_v48 = vsel %vm1042_vm3, %v1048_v2, %v1049_v35  ;;  %v4326_v20 = vld [vmem:[#allocation21_spill] sm:$0xff] }
 0x122   : > { %v1052_v17 = vsel %vm1042_vm3, %v1049_v35, %v1051_v5  ;;  %v1177_v37 = vrot.slane %v1126_v58, 2  ;;  %v1178_v29 = vrot.slane %v1127_v6, 2  ;;  %v1252_v27 = vmul.f32 %v3188_v47, %v920_v19 }
 0x123   : > { %v1253_v36 = vmul.f32 %v3188_v47, %v921_v42  ;;  %v1340_v39 = vrot.slane %v1292_v34, 1  ;;  %v1341_v32 = vrot.slane %v1293_v49, 1  ;;  %v1420_v45 = vmul.f32 %v3020_v9, %v920_v19 }
 0x124   : > { %v1421_v51 = vmul.f32 %v3020_v9, %v921_v42  ;;  %v1101_v63 = vadd.f32 %v1050_v48, %v956_v25  ;;  %v1102_v2 = vadd.f32 %v1052_v17, %v957_v3  ;;  %v1268_v38 = vadd.f32 %v1252_v27, %v1228_v31  ;;  %v3266_v31 = vld [vmem:[#allocation2 + $0x98] sm:$0xff] }
 0x125   : > { %v1269_v5 = vadd.f32 %v1253_v36, %v1229_v43  ;;  %v1076_v58 = vrot.slane %v3222_v50, 1  ;;  %v1368_v35 = vrot.slane %v3233_v8, 1  ;;  %v1659_v19 = vrot.slane %v3239_v23, 1  ;;  %v3264_v36 = vld [vmem:[#allocation2 + $0x90] sm:$0xff] }
 0x126   : > { %v1787_v42 = vrot.slane %v3242_v57, 2  ;;  %v1179_v49 = vsel %vm1171_vm4, %v1177_v37, %v1178_v29  ;;  %v1181_v27 = vsel %vm1171_vm4, %v1178_v29, %v1180_v60  ;;  %v1342_v43 = vsel %vm1042_vm3, %v1340_v39, %v1341_v32 }
 0x127   : > { %v1344_v34 = vsel %vm1042_vm3, %v1341_v32, %v1343_v33  ;;  %v1468_v25 = vrot.slane %v1420_v45, 2  ;;  %v1469_v23 = vrot.slane %v1421_v51, 2  ;;  %v3272_v3 = vadd.f32 %v1179_v49, %v1101_v63 }
 0x128   : > { %v3274_v57 = vadd.f32 %v1181_v27, %v1102_v2  ;;  %v1396_v37 = vadd.f32 %v1342_v43, %v1268_v38  ;;  %v1397_v29 = vadd.f32 %v1344_v34, %v1269_v5  ;;  %v3278_v60 = vmul.f32 %v3119_v44, %v3264_v36 }
 0x129   : > { %v3282_v48 = vmul.f32 %v3119_v44, %v3266_v31  ;;  %v3286_v17 = vmul.f32 %v3002_v61, %v3264_v36  ;;  %v3290_v51 = vmul.f32 %v3002_v61, %v3266_v31  ;;  %v1600_v38 = vmul.f32 %v3025_v10, %v3264_v36 }
 0x12a   : > { %v1601_v45 = vmul.f32 %v3025_v10, %v3266_v31  ;;  %v1728_v63 = vmul.f32 %v3030_v11, %v3264_v36  ;;  %v1729_v32 = vmul.f32 %v3030_v11, %v3266_v31  ;;  %v1470_v33 = vsel %vm1171_vm4, %v1468_v25, %v1469_v23 }
 0x12b   : > { %v1472_v39 = vsel %vm1171_vm4, %v1469_v23, %v1471_v53  ;;  %v3304_v2 = vmul.f32 %v3007_v0, %v3264_v36  ;;  %v3308_v5 = vmul.f32 %v3007_v0, %v3266_v31  ;;  %v3310_v49 = vadd.f32 %v1470_v33, %v1396_v37 }
 0x12c   : > { %v3312_v27 = vadd.f32 %v1472_v39, %v1397_v29  ;;  %v1656_v43 = vrot.slane %v1600_v38, 1  ;;  %v1657_v34 = vrot.slane %v1601_v45, 1  ;;  %v1073_v6 = vrot.slane %v3286_v17, 1 }
 0x12d   : > { %v1074_v25 = vrot.slane %v3290_v51, 1  ;;  %v1784_v21 = vrot.slane %v1728_v63, 2  ;;  %v1785_v53 = vrot.slane %v1729_v32, 2  ;;  %v4314_v37 = vrot.slane %v3165_v18, 2 }
 0x12e   : > { %v4315_v29 = vrot.slane %v3161_v62, 2  ;;  %v4316_v17 = vrot.slane %v3074_v40, 2  ;;  %v3335_v63 = vsel %vm1042_vm3, %v1656_v43, %v1657_v34  ;;  %v3338_v12 = vsel %vm1042_vm3, %v1657_v34, %v1659_v19 }
 0x12f   : > { %v4317_v51 = vmov %v4314_v37  ;;  %4318 = vst [vmem:[#allocation26_spill] sm:$0xff] %v3335_v63  ;;  %4319 = vst [vmem:[#allocation27_spill] sm:$0xff] %v3338_v12  ;;  %v1202_v32 = vrot.slane %v3304_v2, 2  ;;  %v1203_v33 = vrot.slane %v3308_v5, 2  ;;  %v3343_v62 = vsel %vm1171_vm4, %v1784_v21, %v1785_v53 }
 0x130   : > { %v1199_v38 = vsel %vm1171_vm4, %v4315_v29, %v4314_v37  ;;  %v1201_v45 = vsel %vm1171_vm4, %v4317_v51, %v4316_v17  ;;  %4320 = vst [vmem:[#allocation28_spill] sm:$0xff] %v3343_v62  ;;  %v3346_v39 = vsel %vm1171_vm4, %v1785_v53, %v1787_v42  ;;  %v1307_v40 = vmul.f32 %v3014_v4, %v3264_v36 }
 0x131   : > { %4321 = vst [vmem:[#allocation29_spill] sm:$0xff] %v3346_v39  ;;  %v1308_v18 = vmul.f32 %v3014_v4, %v3266_v31  ;;  %v860_v19 = vsel %vm3320_vm11, %v3077_v41, 0.0  ;;  %v849_v43 = vsel %vm2984_vm2, %v3179_v30, 0.0  ;;  %v1238_v42 = vadd.f32 %v1199_v38, %v3181_v46 }
 0x132   : > { %v1239_v34 = vadd.f32 %v1201_v45, %v3183_v22  ;;  %v1262_v53 = vmul.f32 %v3188_v47, %v3264_v36  ;;  %912 = vst.msk [vmem:[#allocation2 + $0xb1] sm:$0xff] %vm865_vm1, %v860_v19  ;;  %901 = vst.msk [vmem:[#allocation2 + $0x31] sm:$0xff] %vm865_vm1, %v849_v43  ;;  %v778_v54 = vmul.f32 %v3090_v56, %v2889_v7  ;;  %v1365_v38 = vrot.slane %v1307_v40, 1 }
 0x133   : > { %v1263_v41 = vmul.f32 %v3188_v47, %v3266_v31  ;;  %v1435_v30 = vmul.f32 %v3020_v9, %v3264_v36  ;;  %v771_v46 = vmul.f32 %v3100_v1, %v2897_v15  ;;  %v781_v7 = vmul.f32 %v3106_v13, %v2900_v16 }
 0x134   : > { %v1436_v56 = vmul.f32 %v3020_v9, %v3266_v31  ;;  %v859_v22 = vsel %vm3320_vm11, %v778_v54, 0.0  ;;  %v770_v37 = vmul.f32 %v3108_v28, %v2907_v26  ;;  %v780_v29 = vmul.f32 %v3167_v55, %v2928_v59 }
 0x135   : > { %v1366_v17 = vrot.slane %v1308_v18, 1  ;;  %911 = vst.msk [vmem:[#allocation2 + $0xa9] sm:$0xff] %vm865_vm1, %v859_v22  ;;  %v852_v15 = vsel %vm3362_vm12, %v771_v46, 0.0  ;;  %v862_v16 = vsel %vm3378_vm13, %v781_v7, 0.0  ;;  %v1278_v1 = vadd.f32 %v1262_v53, %v1238_v42 }
 0x136   : > { %v1279_v13 = vadd.f32 %v1263_v41, %v1239_v34  ;;  %904 = vst.msk [vmem:[#allocation2 + $0x51] sm:$0xff] %vm865_vm1, %v852_v15  ;;  %914 = vst.msk [vmem:[#allocation2 + $0xc9] sm:$0xff] %vm865_vm1, %v862_v16  ;;  %v851_v26 = vsel %vm3362_vm12, %v770_v37, 0.0  ;;  %v861_v59 = vsel %vm3378_vm13, %v780_v29, 0.0  ;;  %v1002_v28 = vmul.f32 %v3002_v61, %v925_v24 }
 0x137   : > { %v3411_v55 = vmul.f32 %v3007_v0, %v925_v24  ;;  %v3414_v23 = vmul.f32 %v3014_v4, %v925_v24  ;;  %v3417_v51 = vmul.f32 %v3020_v9, %v925_v24  ;;  %903 = vst.msk [vmem:[#allocation2 + $0x49] sm:$0xff] %vm865_vm1, %v851_v26  ;;  %913 = vst.msk [vmem:[#allocation2 + $0xc1] sm:$0xff] %vm865_vm1, %v861_v59  ;;  %v1493_v45 = vrot.slane %v1435_v30, 2  ;;  %v4332_v59 = vld [vmem:[#allocation14_spill] sm:$0xff] }
 0x138   : > { %v1494_v40 = vrot.slane %v1436_v56, 2  ;;  %v3422_v18 = vmul.f32 %v3025_v10, %v925_v24  ;;  %v3425_v19 = vmul.f32 %v3030_v11, %v925_v24  ;;  %v1367_v43 = vsel %vm1042_vm3, %v1365_v38, %v1366_v17 }
 0x139   : > { %v1369_v21 = vsel %vm1042_vm3, %v1366_v17, %v1368_v35  ;;  %v1075_v42 = vsel %vm1042_vm3, %v1073_v6, %v1074_v25  ;;  %v1077_v34 = vsel %vm1042_vm3, %v1074_v25, %v1076_v58  ;;  %v1406_v53 = vadd.f32 %v1367_v43, %v1278_v1  ;;  %v3443_v46 = vld [vmem:[#allocation2 + $0x30] sm:$0xff]  ;;  %v3445_v8 = vld [vmem:[#allocation2 + $0x38] sm:$0xff] }
 0x13a   : > { %v1407_v54 = vadd.f32 %v1369_v21, %v1279_v13  ;;  %v3437_v41 = vmul.f32 %v4326_v20, %v3264_v36  ;;  %v3441_v30 = vmul.f32 %v4326_v20, %v3266_v31  ;;  %v1056_v35 = vrot.slane %v1002_v28, 1  ;;  %v940_v38 = vld [vmem:[#allocation2 + $0xb8] sm:$0x3]  ;;  %v4333_v21 = vld [vmem:[#allocation6_spill] sm:$0xff] }
 0x13b   : > { %v1348_v50 = vrot.slane %v3414_v23, 1  ;;  %v1639_v25 = vrot.slane %v3422_v18, 1  ;;  %v1767_v36 = vrot.slane %v3425_v19, 2  ;;  %v1111_v7 = vadd.f32 %v1075_v42, %v3278_v60 }
 0x13c   : > { %4327 = vst [vmem:[#allocation21_spill] sm:$0xff] %v3437_v41  ;;  %4328 = vst [vmem:[#allocation30_spill] sm:$0xff] %v3441_v30  ;;  %v1112_v31 = vadd.f32 %v1077_v34, %v3282_v48  ;;  %v1000_v56 = vmul.f32 %v3002_v61, %v3443_v46  ;;  %v1001_v24 = vmul.f32 %v3002_v61, %v3445_v8  ;;  %v4329_v37 = vrot.slane %v3236_v14, 2  ;;  %v4331_v14 = vld [vmem:[#allocation9_spill] sm:$0xff] }
 0x13d   : > { %v1495_v22 = vsel %vm1171_vm4, %v1493_v45, %v1494_v40  ;;  %v1204_v60 = vsel %vm1171_vm4, %v1202_v32, %v1203_v33  ;;  %v4330_v48 = vrot.slane %v3225_v52, 2  ;;  %v713_v26 = vadd.f32 1.0, %v4331_v14  ;;  %v4334_v34 = vld [vmem:[#allocation17_spill] sm:$0xff] }
 0x13e   : > { %v1497_v29 = vsel %vm1171_vm4, %v1494_v40, %v4329_v37  ;;  %v1534_v17 = vadd.f32 %v1495_v22, %v1406_v53  ;;  %v1053_v1 = vrot.slane %v1000_v56, 1  ;;  %v1054_v13 = vrot.slane %v1001_v24, 1 }
 0x13f   : > { %v1535_v15 = vadd.f32 %v1497_v29, %v1407_v54  ;;  %v1206_v16 = vsel %vm1171_vm4, %v1203_v33, %v4330_v48  ;;  %v3474_v28 = vadd.f32 1.0, %v4332_v59  ;;  %v958_v45 = vmul.f32 %v3119_v44, %v3443_v46  ;;  %v3519_v29 = vld [vmem:[#allocation2 + $0xa8] sm:$0xff] }
 0x140   : > { %v959_v2 = vmul.f32 %v3119_v44, %v3445_v8  ;;  %v3480_v32 = vadd.f32 %v1204_v60, %v1111_v7  ;;  %v3482_v52 = vadd.f32 %v1206_v16, %v1112_v31  ;;  %v1605_v5 = vmul.f32 %v3025_v10, %v940_v38  ;;  %v4335_v31 = vld [vmem:[#allocation20_spill] sm:$0xff]  ;;  %v3521_v60 = vld [vmem:[#allocation2 + $0xb0] sm:$0xff] }
 0x141   : > { %v3486_v33 = vmul.f32 %v3030_v11, %v940_v38  ;;  %v1055_v40 = vsel %vm1042_vm3, %v1053_v1, %v1054_v13  ;;  %v1057_v18 = vsel %vm1042_vm3, %v1054_v13, %v1056_v35  ;;  %v3495_v42 = vadd.s32 9, %v4333_v21 }
 0x142   : > { %v3490_v19 = vadd.f32 %v1055_v40, %v958_v45  ;;  %v3492_v43 = vadd.f32 %v1057_v18, %v959_v2  ;;  %v3498_v53 = vadd.f32 1.0, %v4334_v34  ;;  %v3501_v54 = vmul.f32 %v3002_v61, %v940_v38 }
 0x143   : > { %v3504_v7 = vmul.f32 %v3007_v0, %v940_v38  ;;  %2535 = vrcp.f32 %v713_v26  ;;  %v3507_v56 = vadd.f32 1.0, %v4335_v31  ;;  %v3510_v35 = vmul.f32 %v3014_v4, %v940_v38 }
 0x144   : > { %v3513_v24 = vmul.f32 %v3020_v9, %v940_v38  ;;  %v1548_v22 = vmul.f32 %v4326_v20, %v3443_v46  ;;  %v1549_v37 = vmul.f32 %v4326_v20, %v3445_v8  ;;  %v1664_v48 = vrot.slane %v1605_v5, 1 }
 0x145   : > { %v1792_v16 = vrot.slane %v3486_v33, 2  ;;  %v1588_v1 = vmul.f32 %v3025_v10, %v3443_v46  ;;  %v1589_v38 = vmul.f32 %v3025_v10, %v3445_v8  ;;  %v1716_v26 = vmul.f32 %v3030_v11, %v3443_v46 }
 0x146   : > { %v1564_v13 = vadd.f32 %v1548_v22, %v3310_v49  ;;  %v1565_v14 = vadd.f32 %v1549_v37, %v3312_v27  ;;  %v1717_v59 = vmul.f32 %v3030_v11, %v3445_v8  ;;  %v1558_v5 = vmul.f32 %v4326_v20, %v3519_v29 }
 0x147   : > { %v1636_v45 = vrot.slane %v1588_v1, 1  ;;  %v1637_v2 = vrot.slane %v1589_v38, 1  ;;  %v1559_v33 = vmul.f32 %v4326_v20, %v3521_v60  ;;  %v1764_v40 = vrot.slane %v1716_v26, 2  ;;  %v3549_v26 = vld [vmem:[%s4264_s5] ss:$0 sm:$0xff] }
 0x148   : > { %v1765_v18 = vrot.slane %v1717_v59, 2  ;;  %v1603_v49 = vmul.f32 %v3025_v10, %v3519_v29  ;;  %v1604_v27 = vmul.f32 %v3025_v10, %v3521_v60  ;;  %v1574_v31 = vadd.f32 %v1558_v5, %v1534_v17 }
 0x149   : > { %v1638_v21 = vsel %vm1042_vm3, %v1636_v45, %v1637_v2  ;;  %v1640_v34 = vsel %vm1042_vm3, %v1637_v2, %v1639_v25  ;;  %v1575_v22 = vadd.f32 %v1559_v33, %v1535_v15  ;;  %v1731_v45 = vmul.f32 %v3030_v11, %v3519_v29 }
 0x14a   : > { %v1692_v37 = vadd.f32 %v1638_v21, %v1564_v13  ;;  %v1693_v1 = vadd.f32 %v1640_v34, %v1565_v14  ;;  %v1766_v38 = vsel %vm1171_vm4, %v1764_v40, %v1765_v18  ;;  %v1768_v58 = vsel %vm1171_vm4, %v1765_v18, %v1767_v36  ;;  %v3562_v14 = vld [vmem:[%s4265_s6] ss:$0 sm:$0xff] }
 0x14b   : > { %v1661_v59 = vrot.slane %v1603_v49, 1  ;;  %v1662_v6 = vrot.slane %v1604_v27, 1  ;;  %v1732_v25 = vmul.f32 %v3030_v11, %v3521_v60  ;;  %v1295_v17 = vmul.f32 %v3014_v4, %v3443_v46 }
 0x14c   : > { %v1296_v15 = vmul.f32 %v3014_v4, %v3445_v8  ;;  %v1820_v36 = vadd.f32 %v1766_v38, %v1692_v37  ;;  %v1821_v13 = vadd.f32 %v1768_v58, %v1693_v1  ;;  %v1789_v33 = vrot.slane %v1731_v45, 2 }
 0x14d   : > { %v1663_v2 = vsel %vm1042_vm3, %v1661_v59, %v1662_v6  ;;  %v1665_v5 = vsel %vm1042_vm3, %v1662_v6, %v1664_v48  ;;  %v1790_v40 = vrot.slane %v1732_v25, 2  ;;  %v1129_v58 = vmul.f32 %v3007_v0, %v3443_v46 }
 0x14e   : > { %v1843_v18 = vmul.f32 %v3549_v26, %v1820_v36  ;;  %v1844_v49 = vmul.f32 %v3549_v26, %v1821_v13  ;;  %v1702_v27 = vadd.f32 %v1663_v2, %v1574_v31  ;;  %v1703_v21 = vadd.f32 %v1665_v5, %v1575_v22 }
 0x14f   : > { %v1130_v34 = vmul.f32 %v3007_v0, %v3445_v8  ;;  %v1791_v37 = vsel %vm1171_vm4, %v1789_v33, %v1790_v40  ;;  %v1793_v1 = vsel %vm1171_vm4, %v1790_v40, %v1792_v16  ;;  %v1254_v59 = vmul.f32 %v3188_v47, %v3443_v46 }
 0x150   : > { %v3574_v38 = vpop.eup %2535  ;;  %v3577_v6 = vadd.f32 %v3562_v14, %v1843_v18  ;;  %v3580_v48 = vadd.f32 %v3562_v14, %v1844_v49  ;;  %v1830_v31 = vadd.f32 %v1791_v37, %v1702_v27  ;;  %v1831_v22 = vadd.f32 %v1793_v1, %v1703_v21 }
 0x151   : > { %v1255_v45 = vmul.f32 %v3188_v47, %v3445_v8  ;;  %v1345_v25 = vrot.slane %v1295_v17, 1  ;;  %v1346_v36 = vrot.slane %v1296_v15, 1  ;;  %v1270_v18 = vadd.f32 %v1254_v59, %v3272_v3 }
 0x152   : > { %v2313_v16 = vmul.f32 -1.442695, %v3577_v6  ;;  %v2314_v13 = vmul.f32 -1.442695, %v3580_v48  ;;  %v1853_v2 = vmul.f32 %v3549_v26, %v1830_v31  ;;  %v1854_v5 = vmul.f32 %v3549_v26, %v1831_v22  ;;  %v928_v31 = vld [vmem:[#allocation2 + $0x58] sm:$0x3] }
 0x153   : > { %v1271_v49 = vadd.f32 %v1255_v45, %v3274_v57  ;;  %v1182_v37 = vrot.slane %v1129_v58, 2  ;;  %v1183_v1 = vrot.slane %v1130_v34, 2  ;;  %v1347_v22 = vsel %vm1042_vm3, %v1345_v25, %v1346_v36  ;;  %v943_v34 = vld [vmem:[#allocation2 + $0xd0] sm:$0x3] }
 0x154   : > { %2537 = vpow2.f32 %v2313_v16  ;;  %v3596_v17 = vadd.f32 %v3562_v14, %v1853_v2  ;;  %v3599_v15 = vadd.f32 %v3562_v14, %v1854_v5  ;;  %v1349_v3 = vsel %vm1042_vm3, %v1346_v36, %v1348_v50 }
 0x155   : > { %2539 = vpow2.f32 %v2314_v13  ;;  %v1398_v45 = vadd.f32 %v1347_v22, %v1270_v18  ;;  %v1399_v16 = vadd.f32 %v1349_v3, %v1271_v49  ;;  %v1423_v2 = vmul.f32 %v3020_v9, %v3443_v46 }
 0x156   : > { %v2323_v57 = vmul.f32 -1.442695, %v3596_v17  ;;  %v2324_v59 = vmul.f32 -1.442695, %v3599_v15  ;;  %v1424_v58 = vmul.f32 %v3020_v9, %v3445_v8  ;;  %v3613_v25 = vmul.f32 %v3002_v61, %v928_v31 }
 0x157   : > { %v3616_v23 = vmul.f32 %v3007_v0, %v928_v31  ;;  %v3619_v50 = vmul.f32 %v3014_v4, %v928_v31  ;;  %v3622_v36 = vmul.f32 %v3020_v9, %v928_v31  ;;  %v1184_v46 = vsel %vm1171_vm4, %v1182_v37, %v1183_v1 }
 0x158   : > { %2541 = vpow2.f32 %v2323_v57  ;;  %v4336_v13 = vrot.slane %v3411_v55, 2  ;;  %v1593_v5 = vmul.f32 %v3025_v10, %v928_v31  ;;  %v3630_v18 = vmul.f32 %v3030_v11, %v928_v31 }
 0x159   : > { %2543 = vpow2.f32 %v2324_v59  ;;  %v3633_v49 = vmul.f32 %v3014_v4, %v943_v34  ;;  %v3636_v22 = vadd.f32 %v1184_v46, %v3490_v19  ;;  %v3639_v3 = vmul.f32 %v3020_v9, %v943_v34 }
 0x15a   : > { %v1186_v8 = vsel %vm1171_vm4, %v1183_v1, %v4336_v13  ;;  %v3642_v37 = vmul.f32 %v3025_v10, %v943_v34  ;;  %v3645_v55 = vmul.f32 %v3030_v11, %v943_v34  ;;  %v3647_v1 = vld [vmem:[#allocation2 + $0x48] sm:$0xff]  ;;  %v1473_v57 = vrot.slane %v1423_v2, 2  ;;  %v3660_v13 = vld [vmem:[#allocation2 + $0x50] sm:$0xff] }
 0x15b   : > { %4337 = vst [vmem:[#allocation9_spill] sm:$0xff] %v3633_v49  ;;  %4338 = vst [vmem:[#allocation14_spill] sm:$0xff] %v3639_v3  ;;  %v3650_v31 = vadd.f32 %v1186_v8, %v3492_v43  ;;  %v1474_v59 = vrot.slane %v1424_v58, 2  ;;  %v3654_v19 = vmul.f32 %v3014_v4, %v3519_v29  ;;  %v3658_v46 = vmul.f32 %v3014_v4, %v3521_v60  ;;  %v4340_v49 = vld [vmem:[#allocation8_spill] sm:$0xff] }
 0x15c   : > { %v1644_v2 = vrot.slane %v1593_v5, 1  ;;  %v1772_v58 = vrot.slane %v3630_v18, 2  ;;  %v3670_v21 = vmul.f32 %v3119_v44, %v3647_v1  ;;  %v3677_v33 = vmul.f32 %v3119_v44, %v3660_v13 }
 0x15d   : > { %v3681_v5 = vmul.f32 %v3002_v61, %v3647_v1  ;;  %v3685_v18 = vmul.f32 %v3002_v61, %v3660_v13  ;;  %v1475_v8 = vsel %vm1171_vm4, %v1473_v57, %v1474_v59  ;;  %v4339_v27 = vrot.slane %v3417_v51, 2 }
 0x15e   : > { %v1526_v40 = vadd.f32 %v1475_v8, %v1398_v45  ;;  %v1550_v44 = vmul.f32 %v4326_v20, %v3647_v1  ;;  %v1551_v62 = vmul.f32 %v4326_v20, %v3660_v13  ;;  %v1591_v61 = vmul.f32 %v3025_v10, %v3647_v1 }
 0x15f   : > { %v1477_v43 = vsel %vm1171_vm4, %v1474_v59, %v4339_v27  ;;  %v1592_v51 = vmul.f32 %v3025_v10, %v3660_v13  ;;  %v1719_v27 = vmul.f32 %v3030_v11, %v3647_v1  ;;  %v1720_v59 = vmul.f32 %v3030_v11, %v3660_v13 }
 0x160   : > { %v1527_v39 = vadd.f32 %v1477_v43, %v1399_v16  ;;  %v1566_v16 = vadd.f32 %v1550_v44, %v1526_v40  ;;  %v1641_v43 = vrot.slane %v1591_v61, 1  ;;  %v3706_v41 = vmul.f32 %v3007_v0, %v3647_v1 }
 0x161   : > { %v2538_v34 = vpop.eup %2537  ;;  %v1769_v8 = vrot.slane %v1719_v27, 2  ;;  %v3710_v3 = vmul.f32 %v3007_v0, %v3660_v13  ;;  %v1264_v44 = vmul.f32 %v3188_v47, %v3519_v29  ;;  %v1265_v0 = vmul.f32 %v3188_v47, %v3521_v60 }
 0x162   : > { %v2540_v12 = vpop.eup %2539  ;;  %v1930_v63 = vadd.f32 1.0, %v2538_v34  ;;  %v1567_v57 = vadd.f32 %v1551_v62, %v1527_v39  ;;  %v1642_v34 = vrot.slane %v1592_v51, 1  ;;  %vm799_vm14 = vcmp.ge.s32.totalorder %v4340_v49, 0 }
 0x163   : > { %v1931_v45 = vadd.f32 1.0, %v2540_v12  ;;  %v1770_v12 = vrot.slane %v1720_v59, 2  ;;  %v1280_v59 = vadd.f32 %v1264_v44, %v3480_v32  ;;  %vm809_vm15 = vcmp.lt.s32.totalorder %v4340_v49, 16  ;;  %v3757_v44 = vld [vmem:[#allocation2 + $0xc8] sm:$0xff] }
 0x164   : > { %2545 = vrcp.f32 %v1930_v63  ;;  %v1643_v63 = vsel %vm1042_vm3, %v1641_v43, %v1642_v34  ;;  %v1645_v39 = vsel %vm1042_vm3, %v1642_v34, %v1644_v2  ;;  %v1281_v34 = vadd.f32 %v1265_v0, %v3482_v52  ;;  %vm3814_vm2 = vmand %vm799_vm14, %vm809_vm15 }
 0x165   : > { %v2542_v30 = vpop.eup %2541  ;;  %2547 = vrcp.f32 %v1931_v45  ;;  %v1694_v51 = vadd.f32 %v1643_v63, %v1566_v16  ;;  %v1695_v27 = vadd.f32 %v1645_v39, %v1567_v57  ;;  %v1771_v45 = vsel %vm1171_vm4, %v1769_v8, %v1770_v12 }
 0x166   : > { %v2544_v40 = vpop.eup %2543  ;;  %v1940_v62 = vadd.f32 1.0, %v2542_v30  ;;  %v1773_v30 = vsel %vm1171_vm4, %v1770_v12, %v1772_v58  ;;  %v1058_v16 = vrot.slane %v3681_v5, 1  ;;  %v1059_v57 = vrot.slane %v3685_v18, 1 }
 0x167   : > { %v1941_v61 = vadd.f32 1.0, %v2544_v40  ;;  %v1822_v2 = vadd.f32 %v1771_v45, %v1694_v51  ;;  %v1823_v43 = vadd.f32 %v1773_v30, %v1695_v27  ;;  %v1370_v8 = vrot.slane %v3654_v19, 1 }
 0x168   : > { %2549 = vrcp.f32 %v1940_v62  ;;  %v1371_v58 = vrot.slane %v3658_v46, 1  ;;  %v1438_v52 = vmul.f32 %v3020_v9, %v3519_v29  ;;  %v1439_v40 = vmul.f32 %v3020_v9, %v3521_v60  ;;  %v3755_v9 = vld [vmem:[#allocation2 + $0xc0] sm:$0xff] }
 0x169   : > { %2551 = vrcp.f32 %v1941_v61  ;;  %v1845_v32 = vmul.f32 %v3549_v26, %v1822_v2  ;;  %v1846_v12 = vmul.f32 %v3549_v26, %v1823_v43  ;;  %v1187_v62 = vrot.slane %v3706_v41, 2 }
 0x16a   : > { %v1188_v5 = vrot.slane %v3710_v3, 2  ;;  %v1372_v18 = vsel %vm1042_vm3, %v1370_v8, %v1371_v58  ;;  %v4341_v19 = vrot.slane %v3510_v35, 1  ;;  %v1060_v27 = vsel %vm1042_vm3, %v1058_v16, %v1059_v57 }
 0x16b   : > { %v3750_v63 = vadd.f32 %v3562_v14, %v1845_v32  ;;  %v3753_v39 = vadd.f32 %v3562_v14, %v1846_v12  ;;  %v1408_v61 = vadd.f32 %v1372_v18, %v1280_v59  ;;  %v4342_v35 = vrot.slane %v3613_v25, 1 }
 0x16c   : > { %v1374_v46 = vsel %vm1042_vm3, %v1371_v58, %v4341_v19  ;;  %v1498_v45 = vrot.slane %v1438_v52, 2  ;;  %v1499_v30 = vrot.slane %v1439_v40, 2  ;;  %v3767_v2 = vmul.f32 %v3014_v4, %v3647_v1 }
 0x16d   : > { %v1409_v51 = vadd.f32 %v1374_v46, %v1281_v34  ;;  %v3763_v0 = vsel %vm1042_vm3, %v1059_v57, %v4342_v35  ;;  %v3771_v43 = vmul.f32 %v3014_v4, %v3660_v13  ;;  %v2315_v59 = vmul.f32 -1.442695, %v3750_v63 }
 0x16e   : > { %v2316_v34 = vmul.f32 -1.442695, %v3753_v39  ;;  %v1500_v25 = vsel %vm1171_vm4, %v1498_v45, %v1499_v30  ;;  %v4343_v16 = vrot.slane %v3513_v24, 2  ;;  %v1560_v8 = vmul.f32 %v4326_v20, %v3755_v9 }
 0x16f   : > { %v1561_v58 = vmul.f32 %v4326_v20, %v3757_v44  ;;  %2553 = vpow2.f32 %v2315_v59  ;;  %v1536_v4 = vadd.f32 %v1500_v25, %v1408_v61  ;;  %v1606_v52 = vmul.f32 %v3025_v10, %v3755_v9  ;;  %v4346_v25 = vld [vmem:[#allocation3_spill] sm:$0xff] }
 0x170   : > { %v1502_v57 = vsel %vm1171_vm4, %v1499_v30, %v4343_v16  ;;  %2555 = vpow2.f32 %v2316_v34  ;;  %v1607_v24 = vmul.f32 %v3025_v10, %v3757_v44  ;;  %v1734_v19 = vmul.f32 %v3030_v11, %v3755_v9  ;;  %v3806_v10 = vld [vmem:[%s4263_s4 + $0x8] ss:$0 sm:$0xff] }
 0x171   : > { %v2546_v32 = vpop.eup %2545  ;;  %v1537_v12 = vadd.f32 %v1502_v57, %v1409_v51  ;;  %v1576_v46 = vadd.f32 %v1560_v8, %v1536_v4  ;;  %v1735_v11 = vmul.f32 %v3806_v10, %v3757_v44  ;;  %v1350_v34 = vrot.slane %v3767_v2, 1 }
 0x172   : > { %v2548_v40 = vpop.eup %2547  ;;  %v3787_v18 = vmul.f32 %v2546_v32, %v3577_v6  ;;  %v1666_v6 = vrot.slane %v1606_v52, 1  ;;  %v1667_v35 = vrot.slane %v1607_v24, 1  ;;  %v1794_v45 = vrot.slane %v1734_v19, 2 }
 0x173   : > { %v3799_v20 = vmul.f32 %v2548_v40, %v3580_v48  ;;  %v1577_v61 = vadd.f32 %v1561_v58, %v1537_v12  ;;  %v773_v16 = vmul.f32 %v3574_v38, %v4346_v25  ;;  %2557 = vrcp.f32 %v3474_v28  ;;  %v4357_v48 = vld [vmem:[#allocation7_spill] sm:$0xff] }
 0x174   : > { %v2349_v51 = vpack.c.bf16 %v3787_v18, %v3787_v18  ;;  %v1668_v8 = vsel %vm1042_vm3, %v1666_v6, %v1667_v35  ;;  %v4347_v58 = vrot.slane %v3642_v37, 1  ;;  %v1795_v4 = vrot.slane %v1735_v11, 2  ;;  %v3863_v6 = vld [vmem:[%s4263_s4 + $0x5] ss:$0 sm:$0xff] }
 0x175   : > { %v2550_v30 = vpop.eup %2549  ;;  %v2350_v59 = vpack.c.bf16 %v3799_v20, %v3799_v20  ;;  %v1704_v28 = vadd.f32 %v1668_v8, %v1576_v46  ;;  %v854_v12 = vsel %vm3814_vm2, %v773_v16, 0.0  ;;  %v1351_v37 = vrot.slane %v3771_v43, 1 }
 0x176   : > { %v2552_v57 = vpop.eup %2551  ;;  %2059 = vst.msk [vmem:[%s3796_s14] sm:$0xf] %vm2058_vm0, %v2349_v51  ;;  %v3827_v49 = vmul.f32 %v2550_v30, %v3596_v17  ;;  %v1670_v32 = vsel %vm1042_vm3, %v1667_v35, %v4347_v58  ;;  %v1796_v52 = vsel %vm1171_vm4, %v1794_v45, %v1795_v4  ;;  %v4348_v40 = vrot.slane %v3645_v55, 2 }
 0x177   : > { %2060 = vst.msk [vmem:[%s3796_s14 + $0x4] sm:$0xf] %vm2058_vm0, %v2350_v59  ;;  %v3836_v38 = vmul.f32 %v2552_v57, %v3599_v15  ;;  %v1705_v2 = vadd.f32 %v1670_v32, %v1577_v61  ;;  %v1832_v19 = vadd.f32 %v1796_v52, %v1704_v28  ;;  %2559 = vrcp.f32 %v3498_v53 }
 0x178   : > { %v2359_v17 = vpack.c.bf16 %v3827_v49, %v3827_v49  ;;  %v1798_v24 = vsel %vm1171_vm4, %v1795_v4, %v4348_v40  ;;  %906 = vst.msk [vmem:[#allocation2 + $0x69] sm:$0xff] %vm865_vm1, %v854_v12  ;;  %v3854_v61 = vadd.f32 %v1060_v27, %v3670_v21  ;;  %v1256_v43 = vmul.f32 %v3188_v47, %v3647_v1 }
 0x179   : > { %v2360_v15 = vpack.c.bf16 %v3836_v38, %v3836_v38  ;;  %v1833_v46 = vadd.f32 %v1798_v24, %v1705_v2  ;;  %v1257_v55 = vmul.f32 %v3188_v47, %v3660_v13  ;;  %v3867_v51 = vmul.f32 %v3863_v6, %v3647_v1 }
 0x17a   : > { %2069 = vst.msk [vmem:[%s3796_s14 + $0x28] sm:$0xf] %vm2058_vm0, %v2359_v17  ;;  %v3873_v53 = vadd.f32 %v3763_v0, %v3677_v33  ;;  %v3877_v21 = vmul.f32 %v3863_v6, %v3660_v13  ;;  %v1855_v27 = vmul.f32 %v3549_v26, %v1832_v19  ;;  %v1272_v11 = vadd.f32 %v1256_v43, %v3636_v22  ;;  %v3897_v22 = vld [vmem:[%s4263_s4 + $0x1] ss:$0 sm:$0xff]  ;;  %v3923_v19 = vld [vmem:[%s4263_s4 + $0x4] ss:$0 sm:$0xff] }
 0x17b   : > { %2070 = vst.msk [vmem:[%s3796_s14 + $0x2c] sm:$0xf] %vm2058_vm0, %v2360_v15  ;;  %v1856_v35 = vmul.f32 %v3549_v26, %v1833_v46  ;;  %v1273_v45 = vadd.f32 %v1257_v55, %v3650_v31  ;;  %v1352_v1 = vsel %vm1042_vm3, %v1350_v34, %v1351_v37  ;;  %2561 = vrcp.f32 %v3507_v56  ;;  %v3907_v34 = vld [vmem:[%s4263_s4 + $0x2] ss:$0 sm:$0xff] }
 0x17c   : > { %v4349_v30 = vrot.slane %v3619_v50, 1  ;;  %v3889_v0 = vadd.f32 %v3562_v14, %v1855_v27  ;;  %v1015_v31 = vmul.f32 %v3897_v22, %v3519_v29  ;;  %v2554_v59 = vpop.eup %2553  ;;  %v1478_v56 = vrot.slane %v3867_v51, 2  ;;  %v3948_v27 = vld [vmem:[%s4263_s4] ss:$0 sm:$0xff] }
 0x17d   : > { %v3892_v13 = vadd.f32 %v3562_v14, %v1856_v35  ;;  %v1016_v50 = vmul.f32 %v3897_v22, %v3521_v60  ;;  %v1144_v25 = vmul.f32 %v3907_v34, %v3519_v29  ;;  %v1145_v16 = vmul.f32 %v3907_v34, %v3521_v60  ;;  %v2556_v57 = vpop.eup %2555 }
 0x17e   : > { %v1354_v33 = vsel %vm1042_vm3, %v1351_v37, %v4349_v30  ;;  %v1479_v8 = vrot.slane %v3877_v21, 2  ;;  %v1932_v58 = vadd.f32 1.0, %v2554_v59  ;;  %v2325_v32 = vmul.f32 -1.442695, %v3889_v0 }
 0x17f   : > { %vm804_vm5 = vcmp.ge.s32.totalorder %v3495_v42, 0  ;;  %v1933_v4 = vadd.f32 1.0, %v2556_v57  ;;  %v2326_v28 = vmul.f32 -1.442695, %v3892_v13  ;;  %vm814_vm6 = vcmp.lt.s32.totalorder %v3495_v42, 16 }
 0x180   : > { %v1078_v2 = vrot.slane %v1015_v31, 1  ;;  %2563 = vrcp.f32 %v1932_v58  ;;  %v1079_v12 = vrot.slane %v1016_v50, 1  ;;  %v1207_v17 = vrot.slane %v1144_v25, 2  ;;  %v2558_v52 = vpop.eup %2557  ;;  %vm3941_vm7 = vmand %vm804_vm5, %vm814_vm6  ;;  %v931_v58 = vld [vmem:[#allocation2 + $0x70] sm:$0x3] }
 0x181   : > { %v1208_v37 = vrot.slane %v1145_v16, 2  ;;  %v1400_v40 = vadd.f32 %v1352_v1, %v1272_v11  ;;  %v1401_v24 = vadd.f32 %v1354_v33, %v1273_v45  ;;  %2565 = vrcp.f32 %v1933_v4  ;;  %v4352_v11 = vld [vmem:[#allocation4_spill] sm:$0xff] }
 0x182   : > { %v1266_v15 = vmul.f32 %v3188_v47, %v3755_v9  ;;  %v1313_v46 = vmul.f32 %v3923_v19, %v3755_v9  ;;  %v1314_v43 = vmul.f32 %v3923_v19, %v3757_v44  ;;  %v3931_v55 = vmul.f32 %v3863_v6, %v3755_v9 }
 0x183   : > { %2567 = vpow2.f32 %v2325_v32  ;;  %v3935_v51 = vmul.f32 %v3863_v6, %v3757_v44  ;;  %v968_v9 = vmul.f32 %v3948_v27, %v3519_v29  ;;  %v969_v35 = vmul.f32 %v3948_v27, %v3521_v60  ;;  %v4355_v32 = vld [vmem:[#allocation5_spill] sm:$0xff] }
 0x184   : > { %2569 = vpow2.f32 %v2326_v28  ;;  %v783_v45 = vmul.f32 %v2558_v52, %v4352_v11  ;;  %v1080_v1 = vsel %vm1042_vm3, %v1078_v2, %v1079_v12  ;;  %v4353_v42 = vrot.slane %v3501_v54, 1  ;;  %v2560_v31 = vpop.eup %2559 }
 0x185   : > { %v1209_v33 = vsel %vm1171_vm4, %v1207_v17, %v1208_v37  ;;  %v1267_v59 = vmul.f32 %v3188_v47, %v3757_v44  ;;  %v1113_v50 = vadd.f32 %v1080_v1, %v968_v9  ;;  %v4354_v29 = vrot.slane %v3504_v7, 2  ;;  %v4359_v1 = vld [vmem:[#allocation9_spill] sm:$0xff] }
 0x186   : > { %v1082_v30 = vsel %vm1042_vm3, %v1079_v12, %v4353_v42  ;;  %v1375_v16 = vrot.slane %v1313_v46, 1  ;;  %v1376_v57 = vrot.slane %v1314_v43, 1  ;;  %v864_v54 = vsel %vm3941_vm7, %v783_v45, 0.0 }
 0x187   : > { %v1114_v25 = vadd.f32 %v1082_v30, %v969_v35  ;;  %v1211_v60 = vsel %vm1171_vm4, %v1208_v37, %v4354_v29  ;;  %v772_v4 = vmul.f32 %v2560_v31, %v4355_v32  ;;  %v1503_v28 = vrot.slane %v3931_v55, 2  ;;  %916 = vst.msk [vmem:[#allocation2 + $0xe1] sm:$0xff] %vm865_vm1, %v864_v54 }
 0x188   : > { %v1504_v2 = vrot.slane %v3935_v51, 2  ;;  %v1242_v47 = vadd.f32 %v1209_v33, %v1113_v50  ;;  %v2562_v12 = vpop.eup %2561  ;;  %v1189_v17 = vsel %vm1171_vm4, %v1187_v62, %v1188_v5  ;;  %v4356_v37 = vrot.slane %v3616_v23, 2 }
 0x189   : > { %v1243_v44 = vadd.f32 %v1211_v60, %v1114_v25  ;;  %v853_v7 = vsel %vm3814_vm2, %v772_v4, 0.0  ;;  %v1480_v46 = vsel %vm1171_vm4, %v1478_v56, %v1479_v8  ;;  %v3985_v43 = vmul.f32 %v3897_v22, %v931_v58  ;;  %v4004_v56 = vld [vmem:[%s4263_s4 + $0x7] ss:$0 sm:$0xff] }
 0x18a   : > { %v1191_v52 = vsel %vm1171_vm4, %v1188_v5, %v4356_v37  ;;  %905 = vst.msk [vmem:[#allocation2 + $0x61] sm:$0xff] %vm865_vm1, %v853_v7  ;;  %v782_v55 = vmul.f32 %v2562_v12, %v4357_v48  ;;  %v1282_v51 = vadd.f32 %v1266_v15, %v1242_v47  ;;  %v3990_v41 = vmul.f32 %v3907_v34, %v931_v58  ;;  %v4361_v7 = vld [vmem:[#allocation14_spill] sm:$0xff] }
 0x18b   : > { %v1283_v9 = vadd.f32 %v1267_v59, %v1243_v44  ;;  %v3993_v23 = vmul.f32 %v3923_v19, %v931_v58  ;;  %v3996_v3 = vmul.f32 %v3863_v6, %v931_v58  ;;  %v4358_v62 = vrot.slane %v3622_v36, 2 }
 0x18c   : > { %v4007_v15 = vmul.f32 %v4004_v56, %v931_v58  ;;  %v4010_v35 = vmul.f32 %v3806_v10, %v931_v58  ;;  %v863_v11 = vsel %vm3941_vm7, %v782_v55, 0.0  ;;  %v1377_v45 = vsel %vm1042_vm3, %v1375_v16, %v1376_v57 }
 0x18d   : > { %v1482_v5 = vsel %vm1171_vm4, %v1479_v8, %v4358_v62  ;;  %v1234_v36 = vadd.f32 %v1189_v17, %v3854_v61  ;;  %v1235_v8 = vadd.f32 %v1191_v52, %v3873_v53  ;;  %915 = vst.msk [vmem:[#allocation2 + $0xd9] sm:$0xff] %vm865_vm1, %v863_v11  ;;  %v4360_v42 = vrot.slane %v4359_v1, 1  ;;  %v2564_v31 = vpop.eup %2563  ;;  %v2614_v62 = vld [vmem:[%s4263_s4 + $0x3] ss:$0 sm:$0xff] }
 0x18e   : > { %v1410_v33 = vadd.f32 %v1377_v45, %v1282_v51  ;;  %v1066_v59 = vrot.slane %v3985_v43, 1  ;;  %v4022_v50 = vadd.f32 %v1480_v46, %v1400_v40  ;;  %v4024_v21 = vadd.f32 %v1482_v5, %v1401_v24  ;;  %v2566_v29 = vpop.eup %2565 }
 0x18f   : > { %v1379_v30 = vsel %vm1042_vm3, %v1376_v57, %v4360_v42  ;;  %v4027_v61 = vmul.f32 %v2564_v31, %v3750_v63  ;;  %v1195_v53 = vrot.slane %v3990_v41, 2  ;;  %v1358_v60 = vrot.slane %v3993_v23, 1  ;;  %v4032_v57 = vld [vmem:[#allocation2 + $0xe8] sm:$0x3] }
 0x190   : > { %v1411_v25 = vadd.f32 %v1379_v30, %v1283_v9  ;;  %v1486_v16 = vrot.slane %v3996_v3, 2  ;;  %v2568_v58 = vpop.eup %2567  ;;  %v4035_v40 = vmul.f32 %v2566_v29, %v3753_v39  ;;  %v1649_v24 = vrot.slane %v4007_v15, 1 }
 0x191   : > { %v1777_v54 = vrot.slane %v4010_v35, 2  ;;  %v1505_v63 = vsel %vm1171_vm4, %v1503_v28, %v1504_v2  ;;  %v2570_v32 = vpop.eup %2569  ;;  %v2351_v4 = vpack.c.bf16 %v4027_v61, %v4027_v61  ;;  %v1942_v47 = vadd.f32 1.0, %v2568_v58  ;;  %v929_v44 = vld [vmem:[#allocation2 + $0x60] sm:$0xff]  ;;  %v4042_v12 = vld [vmem:[#allocation2 + $0x68] sm:$0xff] }
 0x192   : > { %v4362_v17 = vrot.slane %v4361_v7, 2  ;;  %v4047_v37 = vadd.f32 %v1505_v63, %v1410_v33  ;;  %v2352_v52 = vpack.c.bf16 %v4035_v40, %v4035_v40  ;;  %v1943_v46 = vadd.f32 1.0, %v2570_v32 }
 0x193   : > { %v4053_v28 = vmul.f32 %v4004_v56, %v4032_v57  ;;  %2061 = vst.msk [vmem:[%s3796_s14 + $0x8] sm:$0xf] %vm2058_vm0, %v2351_v4  ;;  %2571 = vrcp.f32 %v1942_v47  ;;  %v962_v48 = vmul.f32 %v3948_v27, %v929_v44  ;;  %v1006_v55 = vmul.f32 %v3897_v22, %v929_v44 }
 0x194   : > { %v1507_v39 = vsel %vm1171_vm4, %v1504_v2, %v4362_v17  ;;  %v963_v2 = vmul.f32 %v3948_v27, %v4042_v12  ;;  %2062 = vst.msk [vmem:[%s3796_s14 + $0xc] sm:$0xf] %vm2058_vm0, %v2352_v52  ;;  %2573 = vrcp.f32 %v1943_v46  ;;  %v1007_v51 = vmul.f32 %v3897_v22, %v4042_v12 }
 0x195   : > { %v4055_v43 = vadd.f32 %v1507_v39, %v1411_v25  ;;  %v1135_v9 = vmul.f32 %v3907_v34, %v929_v44  ;;  %v1136_v41 = vmul.f32 %v3907_v34, %v4042_v12  ;;  %v1063_v23 = vrot.slane %v1006_v55, 1 }
 0x196   : > { %v1258_v5 = vmul.f32 %v2614_v62, %v929_v44  ;;  %v1259_v27 = vmul.f32 %v2614_v62, %v4042_v12  ;;  %v1301_v11 = vmul.f32 %v3923_v19, %v929_v44  ;;  %v1064_v45 = vrot.slane %v1007_v51, 1  ;;  %v4363_v51 = vld [vmem:[#allocation22_spill] sm:$0xff] }
 0x197   : > { %v1192_v1 = vrot.slane %v1135_v9, 2  ;;  %v1193_v42 = vrot.slane %v1136_v41, 2  ;;  %v1302_v22 = vmul.f32 %v3923_v19, %v4042_v12  ;;  %v1429_v34 = vmul.f32 %v3863_v6, %v929_v44  ;;  %v4364_v41 = vld [vmem:[#allocation23_spill] sm:$0xff] }
 0x198   : > { %v1274_v30 = vadd.f32 %v1258_v5, %v1234_v36  ;;  %v1275_v33 = vadd.f32 %v1259_v27, %v1235_v8  ;;  %v1355_v31 = vrot.slane %v1301_v11, 1  ;;  %v1065_v25 = vsel %vm1042_vm3, %v1063_v23, %v1064_v45  ;;  %v2615_v36 = vld [vmem:[%s4263_s4 + $0x6] ss:$0 sm:$0xff]  ;;  %v4097_v27 = vld [vmem:[#allocation2 + $0xd8] sm:$0xff] }
 0x199   : > { %v1067_v29 = vsel %vm1042_vm3, %v1064_v45, %v1066_v59  ;;  %v1194_v58 = vsel %vm1171_vm4, %v1192_v1, %v1193_v42  ;;  %v1196_v63 = vsel %vm1171_vm4, %v1193_v42, %v1195_v53  ;;  %v1107_v32 = vadd.f32 %v1065_v25, %v962_v48  ;;  %v4365_v1 = vld [vmem:[#allocation10_spill] sm:$0xff] }
 0x19a   : > { %v1108_v4 = vadd.f32 %v1067_v29, %v963_v2  ;;  %v1356_v47 = vrot.slane %v1302_v22, 1  ;;  %v1430_v7 = vmul.f32 %v3863_v6, %v4042_v12  ;;  %v1483_v19 = vrot.slane %v1429_v34, 2  ;;  %v4366_v22 = vld [vmem:[#allocation11_spill] sm:$0xff] }
 0x19b   : > { %v1552_v8 = vmul.f32 %v2615_v36, %v929_v44  ;;  %v1553_v17 = vmul.f32 %v2615_v36, %v4042_v12  ;;  %v1594_v59 = vmul.f32 %v4004_v56, %v929_v44  ;;  %v1236_v39 = vadd.f32 %v1194_v58, %v1107_v32  ;;  %v4368_v32 = vld [vmem:[#allocation13_spill] sm:$0xff] }
 0x19c   : > { %v1237_v52 = vadd.f32 %v1196_v63, %v1108_v4  ;;  %v1357_v53 = vsel %vm1042_vm3, %v1355_v31, %v1356_v47  ;;  %v1359_v46 = vsel %vm1042_vm3, %v1356_v47, %v1358_v60  ;;  %v1484_v55 = vrot.slane %v1430_v7, 2  ;;  %v4367_v63 = vld [vmem:[#allocation12_spill] sm:$0xff] }
 0x19d   : > { %v1402_v48 = vadd.f32 %v1357_v53, %v1274_v30  ;;  %v1403_v2 = vadd.f32 %v1359_v46, %v1275_v33  ;;  %v1568_v6 = vadd.f32 %v1552_v8, %v4022_v50  ;;  %v1276_v9 = vadd.f32 %v4363_v51, %v1236_v39  ;;  %v4369_v47 = vld [vmem:[#allocation24_spill] sm:$0xff]  ;;  %v4370_v8 = vld [vmem:[#allocation25_spill] sm:$0xff]  ;;  %v4372_v46 = vld [vmem:[#allocation30_spill] sm:$0xff] }
 0x19e   : > { %v1277_v23 = vadd.f32 %v4364_v41, %v1237_v52  ;;  %v1569_v62 = vadd.f32 %v1553_v17, %v4024_v21  ;;  %v1595_v5 = vmul.f32 %v4004_v56, %v4042_v12  ;;  %v1485_v11 = vsel %vm1171_vm4, %v1483_v19, %v1484_v55  ;;  %v4371_v52 = vld [vmem:[#allocation21_spill] sm:$0xff]  ;;  %v4373_v51 = vld [vmem:[#allocation15_spill] sm:$0xff]  ;;  %v4374_v41 = vld [vmem:[#allocation16_spill] sm:$0xff] }
 0x19f   : > { %v1487_v60 = vsel %vm1171_vm4, %v1484_v55, %v1486_v16  ;;  %v1646_v45 = vrot.slane %v1594_v59, 1  ;;  %v1722_v50 = vmul.f32 %v3806_v10, %v929_v44  ;;  %v1404_v42 = vadd.f32 %v4365_v1, %v1276_v9  ;;  %v945_v59 = vld [vmem:[#allocation2 + $0xe0] sm:$0xff]  ;;  %v4378_v1 = vld [vmem:[#allocation19_spill] sm:$0xff] }
 0x1a0   : > { %v1405_v30 = vadd.f32 %v4366_v22, %v1277_v23  ;;  %v1530_v33 = vadd.f32 %v1485_v11, %v1402_v48  ;;  %v1531_v21 = vadd.f32 %v1487_v60, %v1403_v2  ;;  %v2572_v31 = vpop.eup %2571  ;;  %v1647_v34 = vrot.slane %v1595_v5, 1  ;;  %v4376_v5 = vld [vmem:[#allocation27_spill] sm:$0xff] }
 0x1a1   : > { %v1723_v25 = vmul.f32 %v3806_v10, %v4042_v12  ;;  %v1774_v29 = vrot.slane %v1722_v50, 2  ;;  %v1562_v58 = vmul.f32 %v2615_v36, %v4097_v27  ;;  %v2574_v3 = vpop.eup %2573  ;;  %v4110_v16 = vmul.f32 %v2572_v31, %v3889_v0  ;;  %v4377_v50 = vld [vmem:[#allocation18_spill] sm:$0xff] }
 0x1a2   : > { %v1532_v44 = vadd.f32 %v4367_v63, %v1404_v42  ;;  %v1533_v4 = vadd.f32 %v4368_v32, %v1405_v30  ;;  %v1570_v7 = vadd.f32 %v4369_v47, %v1530_v33  ;;  %v4116_v19 = vmul.f32 %v2574_v3, %v3892_v13 }
 0x1a3   : > { %v1571_v17 = vadd.f32 %v4370_v8, %v1531_v21  ;;  %v1648_v12 = vsel %vm1042_vm3, %v1646_v45, %v1647_v34  ;;  %v1650_v0 = vsel %vm1042_vm3, %v1647_v34, %v1649_v24  ;;  %v2361_v39 = vpack.c.bf16 %v4110_v16, %v4110_v16  ;;  %v4375_v24 = vld [vmem:[#allocation26_spill] sm:$0xff]  ;;  %v4379_v21 = vld [vmem:[#allocation28_spill] sm:$0xff] }
 0x1a4   : > { %v1572_v53 = vadd.f32 %v4371_v52, %v1532_v44  ;;  %v1573_v48 = vadd.f32 %v4372_v46, %v1533_v4  ;;  %v1696_v2 = vadd.f32 %v1648_v12, %v1568_v6  ;;  %v2362_v13 = vpack.c.bf16 %v4116_v19, %v4116_v19 }
 0x1a5   : > { %v1697_v55 = vadd.f32 %v1650_v0, %v1569_v62  ;;  %v1698_v9 = vadd.f32 %v4373_v51, %v1570_v7  ;;  %v1699_v15 = vadd.f32 %v4374_v41, %v1571_v17  ;;  %2071 = vst.msk [vmem:[%s3796_s14 + $0x30] sm:$0xf] %vm2058_vm0, %v2361_v39  ;;  %v1775_v60 = vrot.slane %v1723_v25, 2 }
 0x1a6   : > { %v1700_v23 = vadd.f32 %v4375_v24, %v1572_v53  ;;  %v1701_v11 = vadd.f32 %v4376_v5, %v1573_v48  ;;  %v1563_v45 = vmul.f32 %v2615_v36, %v945_v59  ;;  %2072 = vst.msk [vmem:[%s3796_s14 + $0x34] sm:$0xf] %vm2058_vm0, %v2362_v13  ;;  %v1578_v62 = vadd.f32 %v1562_v58, %v4047_v37  ;;  %v4380_v36 = vld [vmem:[#allocation29_spill] sm:$0xff] }
 0x1a7   : > { %v1826_v6 = vadd.f32 %v4377_v50, %v1698_v9  ;;  %v1827_v42 = vadd.f32 %v4378_v1, %v1699_v15  ;;  %v1609_v22 = vmul.f32 %v4004_v56, %v4097_v27  ;;  %v1776_v30 = vsel %vm1171_vm4, %v1774_v29, %v1775_v60 }
 0x1a8   : > { %v1778_v33 = vsel %vm1171_vm4, %v1775_v60, %v1777_v54  ;;  %v1828_v31 = vadd.f32 %v4379_v21, %v1700_v23  ;;  %v1829_v34 = vadd.f32 %v4380_v36, %v1701_v11  ;;  %v1824_v25 = vadd.f32 %v1776_v30, %v1696_v2 }
 0x1a9   : > { %v1825_v3 = vadd.f32 %v1778_v33, %v1697_v55  ;;  %v1849_v63 = vmul.f32 %v3549_v26, %v1826_v6  ;;  %v1850_v44 = vmul.f32 %v3549_v26, %v1827_v42  ;;  %v1579_v29 = vadd.f32 %v1563_v45, %v4055_v43 }
 0x1aa   : > { %v1851_v37 = vmul.f32 %v3549_v26, %v1828_v31  ;;  %v1852_v58 = vmul.f32 %v3549_v26, %v1829_v34  ;;  %v1610_v35 = vmul.f32 %v4004_v56, %v945_v59  ;;  %v1847_v54 = vmul.f32 %v3549_v26, %v1824_v25 }
 0x1ab   : > { %v1848_v32 = vmul.f32 %v3549_v26, %v1825_v3  ;;  %v4157_v4 = vadd.f32 %v3562_v14, %v1849_v63  ;;  %v4160_v47 = vadd.f32 %v3562_v14, %v1850_v44  ;;  %v1671_v17 = vrot.slane %v1609_v22, 1 }
 0x1ac   : > { %v4163_v7 = vadd.f32 %v3562_v14, %v1851_v37  ;;  %v4166_v8 = vadd.f32 %v3562_v14, %v1852_v58  ;;  %v1672_v43 = vrot.slane %v1610_v35, 1  ;;  %v4169_v56 = vadd.f32 %v3562_v14, %v1847_v54 }
 0x1ad   : > { %v4172_v12 = vadd.f32 %v3562_v14, %v1848_v32  ;;  %v2319_v0 = vmul.f32 -1.442695, %v4157_v4  ;;  %v2320_v39 = vmul.f32 -1.442695, %v4160_v47  ;;  %v1674_v52 = vrot.slane %v4053_v28, 1 }
 0x1ae   : > { %v1739_v53 = vmul.f32 %v3806_v10, %v4032_v57  ;;  %v2321_v46 = vmul.f32 -1.442695, %v4163_v7  ;;  %v2322_v48 = vmul.f32 -1.442695, %v4166_v8  ;;  %v2317_v2 = vmul.f32 -1.442695, %v4169_v56 }
 0x1af   : > { %v2318_v13 = vmul.f32 -1.442695, %v4172_v12  ;;  %2575 = vpow2.f32 %v2319_v0  ;;  %v1673_v55 = vsel %vm1042_vm3, %v1671_v17, %v1672_v43  ;;  %v1675_v51 = vsel %vm1042_vm3, %v1672_v43, %v1674_v52 }
 0x1b0   : > { %2577 = vpow2.f32 %v2320_v39  ;;  %v1737_v28 = vmul.f32 %v3806_v10, %v4097_v27  ;;  %v1738_v9 = vmul.f32 %v3806_v10, %v945_v59  ;;  %v1706_v57 = vadd.f32 %v1673_v55, %v1578_v62 }
 0x1b1   : > { %2579 = vpow2.f32 %v2317_v2  ;;  %v1707_v41 = vadd.f32 %v1675_v51, %v1579_v29  ;;  %v1802_v15 = vrot.slane %v1739_v53, 2 }
 0x1b2   : > { %2581 = vpow2.f32 %v2318_v13  ;;  %v1799_v24 = vrot.slane %v1737_v28, 2  ;;  %v1800_v23 = vrot.slane %v1738_v9, 2 }
 0x1b3   : > { %2583 = vpow2.f32 %v2321_v46 }
 0x1b4   : > { %2585 = vpow2.f32 %v2322_v48  ;;  %v1801_v5 = vsel %vm1171_vm4, %v1799_v24, %v1800_v23  ;;  %v1803_v11 = vsel %vm1171_vm4, %v1800_v23, %v1802_v15 }
 0x1b5   : > { %v1834_v60 = vadd.f32 %v1801_v5, %v1706_v57  ;;  %v1835_v45 = vadd.f32 %v1803_v11, %v1707_v41 }
 0x1b7   : > { %v1857_v50 = vmul.f32 %v3549_v26, %v1834_v60  ;;  %v1858_v27 = vmul.f32 %v3549_v26, %v1835_v45 }
 0x1b9   : > { %v1880_v10 = vadd.f32 %v3562_v14, %v1857_v50  ;;  %v1881_v59 = vadd.f32 %v3562_v14, %v1858_v27 }
 0x1bb   : > { %v2327_v6 = vmul.f32 -1.442695, %v1880_v10  ;;  %v2328_v1 = vmul.f32 -1.442695, %v1881_v59 }
 0x1bc   : > { %v2576_v42 = vpop.eup %2575 }
 0x1bd   : > { %v2578_v62 = vpop.eup %2577  ;;  %v1936_v22 = vadd.f32 1.0, %v2576_v42  ;;  %2587 = vpow2.f32 %v2327_v6 }
 0x1be   : > { %v2580_v30 = vpop.eup %2579  ;;  %v1937_v33 = vadd.f32 1.0, %v2578_v62  ;;  %2589 = vpow2.f32 %v2328_v1 }
 0x1bf   : > { %v2582_v21 = vpop.eup %2581  ;;  %v1934_v31 = vadd.f32 1.0, %v2580_v30  ;;  %2591 = vrcp.f32 %v1936_v22 }
 0x1c0   : > { %v2584_v36 = vpop.eup %2583  ;;  %v1935_v34 = vadd.f32 1.0, %v2582_v21  ;;  %2593 = vrcp.f32 %v1937_v33 }
 0x1c1   : > { %v2586_v26 = vpop.eup %2585  ;;  %v1938_v25 = vadd.f32 1.0, %v2584_v36  ;;  %2595 = vrcp.f32 %v1934_v31 }
 0x1c2   : > { %v1939_v3 = vadd.f32 1.0, %v2586_v26  ;;  %2597 = vrcp.f32 %v1935_v34 }
 0x1c3   : > { %2599 = vrcp.f32 %v1938_v25 }
 0x1c4   : > { %2601 = vrcp.f32 %v1939_v3 }
 0x1ca   : > { %v2588_v14 = vpop.eup %2587 }
 0x1cb   : > { %v2590_v63 = vpop.eup %2589  ;;  %v1944_v44 = vadd.f32 1.0, %v2588_v14 }
 0x1cc   : > { %v2592_v37 = vpop.eup %2591  ;;  %v1945_v58 = vadd.f32 1.0, %v2590_v63 }
 0x1cd   : > { %v2594_v29 = vpop.eup %2593  ;;  %v1984_v35 = vmul.f32 %v2592_v37, %v4157_v4  ;;  %2603 = vrcp.f32 %v1944_v44 }
 0x1ce   : > { %v2596_v54 = vpop.eup %2595  ;;  %v1985_v32 = vmul.f32 %v2594_v29, %v4160_v47  ;;  %2605 = vrcp.f32 %v1945_v58 }
 0x1cf   : > { %v2598_v17 = vpop.eup %2597  ;;  %v1982_v43 = vmul.f32 %v2596_v54, %v4169_v56  ;;  %v2355_v0 = vpack.c.bf16 %v1984_v35, %v1984_v35 }
 0x1d0   : > { %v2600_v39 = vpop.eup %2599  ;;  %v1983_v52 = vmul.f32 %v2598_v17, %v4172_v12  ;;  %v2356_v53 = vpack.c.bf16 %v1985_v32, %v1985_v32 }
 0x1d1   : > { %v2602_v46 = vpop.eup %2601  ;;  %v1986_v4 = vmul.f32 %v2600_v39, %v4163_v7  ;;  %v2353_v48 = vpack.c.bf16 %v1982_v43, %v1982_v43  ;;  %2065 = vst.msk [vmem:[%s3796_s14 + $0x18] sm:$0xf] %vm2058_vm0, %v2355_v0 }
 0x1d2   : > { %v1987_v47 = vmul.f32 %v2602_v46, %v4166_v8  ;;  %v2354_v2 = vpack.c.bf16 %v1983_v52, %v1983_v52  ;;  %2066 = vst.msk [vmem:[%s3796_s14 + $0x1c] sm:$0xf] %vm2058_vm0, %v2356_v53 }
 0x1d3   : > { %v2357_v56 = vpack.c.bf16 %v1986_v4, %v1986_v4  ;;  %2063 = vst.msk [vmem:[%s3796_s14 + $0x10] sm:$0xf] %vm2058_vm0, %v2353_v48 }
 0x1d4   : > { %v2358_v13 = vpack.c.bf16 %v1987_v47, %v1987_v47  ;;  %2064 = vst.msk [vmem:[%s3796_s14 + $0x14] sm:$0xf] %vm2058_vm0, %v2354_v2 }
 0x1d5   : > { %2067 = vst.msk [vmem:[%s3796_s14 + $0x20] sm:$0xf] %vm2058_vm0, %v2357_v56 }
 0x1d6   : > { %2068 = vst.msk [vmem:[%s3796_s14 + $0x24] sm:$0xf] %vm2058_vm0, %v2358_v13 }
 0x1da   : > { %v2604_v7 = vpop.eup %2603 }
 0x1db   : > { %v2606_v12 = vpop.eup %2605  ;;  %v1992_v55 = vmul.f32 %v2604_v7, %v1880_v10 }
 0x1dc   : > { %v1993_v51 = vmul.f32 %v2606_v12, %v1881_v59  ;;  %2078 = sbr.rel (%p2345_p7) target bundleno = 483 (0x1e3), region = 52 }
 0x1dd   : > { %v2363_v28 = vpack.c.bf16 %v1992_v55, %v1992_v55 }
 0x1de   : > { %v2364_v8 = vpack.c.bf16 %v1993_v51, %v1993_v51 }
 0x1df   : > { %2073 = vst.msk [vmem:[%s3796_s14 + $0x38] sm:$0xf] %vm2058_vm0, %v2363_v28 }
 0x1e0   : > { %2074 = vst.msk [vmem:[%s3796_s14 + $0x3c] sm:$0xf] %vm2058_vm0, %v2364_v8 }
 0x1e1   : > { %vm2079_vm3 = vcmask 253952   ;;  %v2657_v9 = vmov 0.0  }
 0x1e2   : > { %2080 = vst.msk [vmem:[%s2746_s18] sm:$0x1] %vm2079_vm3, %v2657_v9 }
 0x1e3 PF: > { %v2082_v57 = vsel %vm865_vm1, %v3787_v18, 0.0  ;;  %v2083_v41 = vsel %vm865_vm1, %v3799_v20, 0.0  ;;  %v2085_v15 = vsel %vm865_vm1, %v4027_v61, 0.0  ;;  %v2087_v23 = vsel %vm865_vm1, %v4035_v40, 0.0 }
 0x1e4   : > { %v2084_v24 = vadd.f32 %v2083_v41, %v2082_v57  ;;  %v2089_v11 = vsel %vm865_vm1, %v1982_v43, 0.0  ;;  %v2091_v45 = vsel %vm865_vm1, %v1983_v52, 0.0  ;;  %v2093_v27 = vsel %vm865_vm1, %v1984_v35, 0.0 }
 0x1e5   : > { %v2095_v10 = vsel %vm865_vm1, %v1985_v32, 0.0  ;;  %v2097_v59 = vsel %vm865_vm1, %v1986_v4, 0.0  ;;  %v2099_v6 = vsel %vm865_vm1, %v1987_v47, 0.0  ;;  %v2101_v40 = vsel %vm865_vm1, %v3827_v49, 0.0 }
 0x1e6   : > { %v2086_v5 = vadd.f32 %v2085_v15, %v2084_v24  ;;  %v2103_v62 = vsel %vm865_vm1, %v3836_v38, 0.0  ;;  %v2105_v30 = vsel %vm865_vm1, %v4110_v16, 0.0  ;;  %v2107_v21 = vsel %vm865_vm1, %v4116_v19, 0.0 }
 0x1e7   : > { %v2109_v36 = vsel %vm865_vm1, %v1992_v55, 0.0  ;;  %v2111_v49 = vsel %vm865_vm1, %v1993_v51, 0.0  ;;  %vm2120_vm4 = vcmask 253952  }
 0x1e8   : > { %v2088_v60 = vadd.f32 %v2087_v23, %v2086_v5 }
 0x1e9   : > { %v2081_v37 = vld [vmem:[%s2746_s18] sm:$0x1] }
 0x1ea   : > { %v2090_v50 = vadd.f32 %v2089_v11, %v2088_v60 }
 0x1ec   : > { %v2092_v18 = vadd.f32 %v2091_v45, %v2090_v50 }
 0x1ee   : > { %v2094_v20 = vadd.f32 %v2093_v27, %v2092_v18 }
 0x1f0   : > { %v2096_v61 = vadd.f32 %v2095_v10, %v2094_v20 }
 0x1f2   : > { %v2098_v1 = vadd.f32 %v2097_v59, %v2096_v61 }
 0x1f4   : > { %v2100_v42 = vadd.f32 %v2099_v6, %v2098_v1 }
 0x1f6   : > { %v2102_v22 = vadd.f32 %v2101_v40, %v2100_v42 }
 0x1f8   : > { %v2104_v33 = vadd.f32 %v2103_v62, %v2102_v22 }
 0x1fa   : > { %v2106_v31 = vadd.f32 %v2105_v30, %v2104_v33 }
 0x1fc   : > { %v2108_v34 = vadd.f32 %v2107_v21, %v2106_v31 }
 0x1fe   : > { %v2110_v26 = vadd.f32 %v2109_v36, %v2108_v34 }
 0x200   : > { %v2112_v25 = vadd.f32 %v2111_v49, %v2110_v26 }
 0x202   : > { %v2113_v3 = vrot.slane %v2112_v25, 4 }
 0x204   : > { %v2114_v38 = vadd.f32 %v2113_v3, %v2112_v25 }
 0x206   : > { %v2115_v14 = vrot.slane %v2114_v38, 2 }
 0x208   : > { %v2116_v63 = vadd.f32 %v2115_v14, %v2114_v38 }
 0x20a   : > { %v2117_v44 = vrot.slane %v2116_v63, 1 }
 0x20c   : > { %v2118_v16 = vadd.f32 %v2117_v44, %v2116_v63 }
 0x20e   : > { %v2119_v58 = vadd.f32 %v2118_v16, %v2081_v37 }
 0x210   : > { %2121 = vst.msk [vmem:[%s2746_s18] sm:$0x1] %vm2120_vm4, %v2119_v58 }
 0x211 PF: > { %s19_s9 = sadd.s32 1, %s2654_s9   ;;  %s4381_s27 = smov %s2646_s29 }
 0x212   : > { %p16_p8 = scmp.ge.s32.totalorder %s19_s9, 6   ;;  %s4382_s28 = smov %s2650_s30 }
 0x213   : > { %s4383_s29 = smov %s4386_s10  ;;  %s4384_s30 = smov %s4390_s11 }
 0x214   :  { %18 = sbr.rel (!%p16_p8) target bundleno = 3 (0x3), region = 103 }

</bundles_post_ra>
